<compile_context>
chip_gen: v7x
topology: tpu7x:2x2x1
jax: 0.10.0
libtpu: 0.0.40
codegen_flags: <defaults>
</compile_context>

<pallas_src>
import numpy as np
import jax
import jax.numpy as jnp
from jax.experimental import pallas as pl
from jax.experimental.pallas import tpu as pltpu


def _round_up(x, m):
    return (x + m - 1) // m * m


# ---------------------------------------------------------------------------
# Fused kernel: 7 x (matmul + bias + SiLU) + (GAP∘FC) matmul epilogue.
# ---------------------------------------------------------------------------
def _encoder_kernel(x_ref, *refs):
    """refs = [W_1, b_1, ..., W_7, b_7, fc_big, fc_bias, out]

      x_ref:   (B_TILE, H*W*Cin)            bf16  one flattened image per row
      W_l:     (K_l, N_l)                   bf16  block-Toeplitz conv weights
      b_l:     (1, N_l)                     f32   position-tiled bias
      fc_big:  (Hf*Wf*Cf, 128)              bf16  FC with 1/(Hf*Wf) GAP baked in
      fc_bias: (1, 128)                     f32
      out:     (B_TILE, 128)                f32   lane-dense logits
    """
    out_ref = refs[-1]
    fcb_ref = refs[-2]
    fcw_ref = refs[-3]
    wrefs = refs[:-3]
    n_layers = len(wrefs) // 2

    x = x_ref[...]                                    # (B_TILE, K0) bf16
    for li in range(n_layers):
        w = wrefs[2 * li][...]
        bias = wrefs[2 * li + 1][...]
        acc = jnp.dot(x, w, preferred_element_type=jnp.float32) + bias
        acc = acc * jax.nn.sigmoid(acc)               # SiLU in f32 (EUP slot)
        x = acc.astype(jnp.bfloat16)

    # Classifier epilogue: GAP is folded into fc_big, so this is one matmul.
    logits = jnp.dot(x, fcw_ref[...], preferred_element_type=jnp.float32)
    out_ref[...] = logits + fcb_ref[...]


# ---------------------------------------------------------------------------
# Host-side weight preprocessing (done once at init)
# ---------------------------------------------------------------------------
def _expand_conv_toeplitz(w, b, h_in, w_in, stride, pad):
    """Expand (KH,KW,Cin,Cout) conv weights into one block-Toeplitz matrix.

    M[(hi*W_in + wi)*Cin + ci, (ho*W_out + wo)*Cout + co] =
        w[hi - ho*s + pad, wi - wo*s + pad, ci, co]
    (zero where the tap falls outside the input, i.e. zero-padding folded in).
    Multiplying the flattened image row (1, H_in*W_in*Cin) by M performs the
    full 2-D convolution (taps, padding and stride) as a single MXU matmul.
    """
    kh, kw, cin, cout = w.shape
    h_out = (h_in + 2 * pad - kh) // stride + 1
    w_out = (w_in + 2 * pad - kw) // stride + 1
    m = np.zeros((h_in * w_in * cin, h_out * w_out * cout), np.float32)
    for ho in range(h_out):
        for i in range(kh):
            hi = ho * stride + i - pad
            if not (0 <= hi < h_in):
                continue
            for wo in range(w_out):
                for j in range(kw):
                    wi = wo * stride + j - pad
                    if not (0 <= wi < w_in):
                        continue
                    ib = (hi * w_in + wi) * cin
                    ob = (ho * w_out + wo) * cout
                    m[ib:ib + cin, ob:ob + cout] = w[i, j]
    b_t = np.tile(np.asarray(b, np.float32).reshape(1, cout), (1, h_out * w_out))
    return m, b_t, h_out, w_out


# ---------------------------------------------------------------------------
# BaseEncoder (concrete synthetic instantiation)
# ---------------------------------------------------------------------------
class BaseEncoderPallas:
    # (kh, kw, cin, cout, stride)
    _CONV_CFG = [
        (3, 3, 4, 8, 2),    # conv_1
        (3, 3, 8, 8, 1),    # layer_1
        (3, 3, 8, 16, 2),   # layer_2
        (3, 3, 16, 16, 2),  # layer_3
        (3, 3, 16, 24, 1),  # layer_4
        (3, 3, 24, 32, 1),  # layer_5
        (1, 1, 32, 64, 1),  # conv_1x1_exp
    ]
    _NUM_CLASSES = 10
    _OUT_LANES = 128        # lane-dense classifier output; sliced to 10 outside

    def __init__(self, key, in_hw=16):
        # Expanded (block-Toeplitz) weights are built for a fixed input
        # resolution (in_hw x in_hw), matching the fused kernel's flat layout.
        self.in_hw = in_hw
        self.raw_conv = []          # f32 reference parameters
        self.w_big = []             # bf16 block-Toeplitz conv weights
        self.b_tiled = []           # f32 position-tiled biases

        h = w = in_hw
        for (kh, kw, cin, cout, stride) in self._CONV_CFG:
            key, kwk, kbk = jax.random.split(key, 3)
            wt = 0.1 * jax.random.normal(kwk, (kh, kw, cin, cout), jnp.float32)
            bt = 0.01 * jax.random.normal(kbk, (cout,), jnp.float32)
            pad = kh // 2
            self.raw_conv.append((wt, bt, stride, pad))
            m, b_t, h, w = _expand_conv_toeplitz(
                np.asarray(wt), np.asarray(bt), h, w, stride, pad)
            self.w_big.append(jnp.asarray(m, jnp.bfloat16))
            self.b_tiled.append(jnp.asarray(b_t, jnp.float32))

        self.h_final, self.w_final = h, w
        last_c = self._CONV_CFG[-1][3]
        key, kfw, kfb = jax.random.split(key, 3)
        self.fc_w = 0.1 * jax.random.normal(kfw, (last_c, self._NUM_CLASSES),
                                            jnp.float32)
        self.fc_b = 0.01 * jax.random.normal(kfb, (self._NUM_CLASSES,),
                                             jnp.float32)
        # Fold GAP (mean over Hf*Wf positions) into the FC matrix and pad the
        # class dim to 128 lanes for an unmasked lane-dense store.
        n_pos = h * w
        fc_np = np.zeros((n_pos * last_c, self._OUT_LANES), np.float32)
        fc_np[:, :self._NUM_CLASSES] = np.tile(
            np.asarray(self.fc_w, np.float32) / float(n_pos), (n_pos, 1))
        self.fc_big = jnp.asarray(fc_np, jnp.bfloat16)
        fcb_np = np.zeros((1, self._OUT_LANES), np.float32)
        fcb_np[0, :self._NUM_CLASSES] = np.asarray(self.fc_b, np.float32)
        self.fc_b_row = jnp.asarray(fcb_np, jnp.float32)

        self.forward = jax.jit(self._forward)

    # ------------------------------------------------------------------ #
    def _forward(self, x_nchw):
        n, c, h, w = x_nchw.shape
        assert h == self.in_hw and w == self.in_hw
        # NCHW -> one flattened lane-dense row per image: (N, H*W*C) bf16.
        hwc = h * w * c
        x = jnp.transpose(x_nchw, (0, 2, 3, 1)).reshape(n, hwc)
        x = x.astype(jnp.bfloat16)

        # Batch packing along the MXU M (sublane) axis.  Up to 256 images per
        # grid program; batch padded with zero images (dropped after the call).
        # NOTE(v7x): for very large batches one could force the grid length to
        # a multiple of 2 so "parallel" shards across both TensorCores.
        b_tile = min(256, _round_up(n, 8))
        n_pad = _round_up(n, b_tile)
        if n_pad != n:
            x = jnp.pad(x, ((0, n_pad - n), (0, 0)))
        grid = (n_pad // b_tile,)

        in_specs = [pl.BlockSpec((b_tile, hwc), lambda i: (i, 0))]
        args = [x]
        for m, bt in zip(self.w_big, self.b_tiled):
            in_specs.append(pl.BlockSpec(m.shape, lambda i: (0, 0)))
            args.append(m)
            in_specs.append(pl.BlockSpec(bt.shape, lambda i: (0, 0)))
            args.append(bt)
        in_specs.append(pl.BlockSpec(self.fc_big.shape, lambda i: (0, 0)))
        args.append(self.fc_big)
        in_specs.append(pl.BlockSpec(self.fc_b_row.shape, lambda i: (0, 0)))
        args.append(self.fc_b_row)

        out = pl.pallas_call(
            _encoder_kernel,
            grid=grid,
            in_specs=in_specs,
            out_specs=pl.BlockSpec((b_tile, self._OUT_LANES), lambda i: (i, 0)),
            out_shape=jax.ShapeDtypeStruct((n_pad, self._OUT_LANES),
                                           jnp.float32),
            compiler_params=pltpu.CompilerParams(
                dimension_semantics=("parallel",)),
        )(*args)
        return out[:n, :self._NUM_CLASSES]

    def __call__(self, x_nchw):
        return self.forward(x_nchw)

    # ------------------------------------------------------------------ #
    def reference_forward(self, x_nchw):
        """Plain-JAX f32 reference (same math, direct convolutions)."""
        x = jnp.transpose(x_nchw, (0, 2, 3, 1)).astype(jnp.float32)
        for (wt, bt, stride, pad) in self.raw_conv:
            x = jax.lax.conv_general_dilated(
                x, wt, window_strides=(stride, stride),
                padding=[(pad, pad), (pad, pad)],
                dimension_numbers=("NHWC", "HWIO", "NHWC"))
            x = x + bt
            x = x * jax.nn.sigmoid(x)
        pooled = jnp.mean(x, axis=(1, 2))
        return pooled @ self.fc_w + self.fc_b


if __name__ == "__main__":
    key = jax.random.PRNGKey(0)
    key, xk, pk = jax.random.split(key, 3)
    x = jax.random.normal(xk, (2, 4, 16, 16), jnp.float32)  # NCHW (PyTorch-style)

    model = BaseEncoderPallas(pk, in_hw=16)
    out = jax.block_until_ready(model(x))

    assert out.shape == (2, model._NUM_CLASSES), out.shape
    assert bool(jnp.all(jnp.isfinite(out)))

    # Correctness vs. f32 reference (bf16 MXU operands -> loose tolerance).
    ref = jax.block_until_ready(model.reference_forward(x))
    max_err = float(np.max(np.abs(np.asarray(out) - np.asarray(ref))))
    assert np.allclose(np.asarray(out), np.asarray(ref),
                       rtol=5e-2, atol=1e-2), max_err

    print("KERNEL_OK")
</pallas_src>

<mosaic_0001>
module attributes {stable_mosaic.version = 11 : i64} {
  func.func @_encoder_kernel(%arg0: i32, %arg1: memref<8x1024xbf16, #tpu.memory_space<vmem>>, %arg2: memref<1024x512xbf16, #tpu.memory_space<vmem>>, %arg3: memref<1x512xf32, #tpu.memory_space<vmem>>, %arg4: memref<512x512xbf16, #tpu.memory_space<vmem>>, %arg5: memref<1x512xf32, #tpu.memory_space<vmem>>, %arg6: memref<512x256xbf16, #tpu.memory_space<vmem>>, %arg7: memref<1x256xf32, #tpu.memory_space<vmem>>, %arg8: memref<256x64xbf16, #tpu.memory_space<vmem>>, %arg9: memref<1x64xf32, #tpu.memory_space<vmem>>, %arg10: memref<64x96xbf16, #tpu.memory_space<vmem>>, %arg11: memref<1x96xf32, #tpu.memory_space<vmem>>, %arg12: memref<96x128xbf16, #tpu.memory_space<vmem>>, %arg13: memref<1x128xf32, #tpu.memory_space<vmem>>, %arg14: memref<128x256xbf16, #tpu.memory_space<vmem>>, %arg15: memref<1x256xf32, #tpu.memory_space<vmem>>, %arg16: memref<256x128xbf16, #tpu.memory_space<vmem>>, %arg17: memref<1x128xf32, #tpu.memory_space<vmem>>, %arg18: memref<8x128xf32, #tpu.memory_space<vmem>>) attributes {dimension_semantics = [#tpu.dimension_semantics<parallel>], iteration_bounds = array<i64: 1>, scalar_prefetch = 0 : i64, scratch_operands = 0 : i64, tpu.core_type = #tpu.core_type<tc>, window_params = [{transform_indices = @transform_0, window_bounds = array<i64: 8, 1024>}, {pipeline_mode = #tpu.pipeline_mode<synchronous>, transform_indices = @transform_1, window_bounds = array<i64: 1024, 512>}, {pipeline_mode = #tpu.pipeline_mode<synchronous>, transform_indices = @transform_2, window_bounds = array<i64: 1, 512>}, {pipeline_mode = #tpu.pipeline_mode<synchronous>, transform_indices = @transform_3, window_bounds = array<i64: 512, 512>}, {pipeline_mode = #tpu.pipeline_mode<synchronous>, transform_indices = @transform_4, window_bounds = array<i64: 1, 512>}, {pipeline_mode = #tpu.pipeline_mode<synchronous>, transform_indices = @transform_5, window_bounds = array<i64: 512, 256>}, {pipeline_mode = #tpu.pipeline_mode<synchronous>, transform_indices = @transform_6, window_bounds = array<i64: 1, 256>}, {pipeline_mode = #tpu.pipeline_mode<synchronous>, transform_indices = @transform_7, window_bounds = array<i64: 256, 64>}, {pipeline_mode = #tpu.pipeline_mode<synchronous>, transform_indices = @transform_8, window_bounds = array<i64: 1, 64>}, {pipeline_mode = #tpu.pipeline_mode<synchronous>, transform_indices = @transform_9, window_bounds = array<i64: 64, 96>}, {pipeline_mode = #tpu.pipeline_mode<synchronous>, transform_indices = @transform_10, window_bounds = array<i64: 1, 96>}, {pipeline_mode = #tpu.pipeline_mode<synchronous>, transform_indices = @transform_11, window_bounds = array<i64: 96, 128>}, {pipeline_mode = #tpu.pipeline_mode<synchronous>, transform_indices = @transform_12, window_bounds = array<i64: 1, 128>}, {pipeline_mode = #tpu.pipeline_mode<synchronous>, transform_indices = @transform_13, window_bounds = array<i64: 128, 256>}, {pipeline_mode = #tpu.pipeline_mode<synchronous>, transform_indices = @transform_14, window_bounds = array<i64: 1, 256>}, {pipeline_mode = #tpu.pipeline_mode<synchronous>, transform_indices = @transform_15, window_bounds = array<i64: 256, 128>}, {pipeline_mode = #tpu.pipeline_mode<synchronous>, transform_indices = @transform_16, window_bounds = array<i64: 1, 128>}, {transform_indices = @transform_17, window_bounds = array<i64: 8, 128>}]} {
    %c0 = arith.constant 0 : index
    %c0_0 = arith.constant 0 : index
    %0 = vector.load %arg1[%c0, %c0_0] : memref<8x1024xbf16, #tpu.memory_space<vmem>>, vector<8x1024xbf16>
    %c0_1 = arith.constant 0 : index
    %c0_2 = arith.constant 0 : index
    %1 = vector.load %arg2[%c0_1, %c0_2] : memref<1024x512xbf16, #tpu.memory_space<vmem>>, vector<1024x512xbf16>
    %c0_3 = arith.constant 0 : index
    %c0_4 = arith.constant 0 : index
    %2 = vector.load %arg3[%c0_3, %c0_4] : memref<1x512xf32, #tpu.memory_space<vmem>>, vector<1x512xf32>
    %cst = arith.constant dense<0.000000e+00> : vector<8x512xf32>
    %3 = tpu.matmul %0, %1, %cst {dimension_numbers = #tpu.dot_dimension_numbers<[1], [0], [0], [1], [0, 0, 1, 1], [], []>} : vector<8x1024xbf16>, vector<1024x512xbf16>, vector<8x512xf32> -> vector<8x512xf32>
    %4 = vector.broadcast %2 : vector<1x512xf32> to vector<8x512xf32>
    %5 = arith.addf %3, %4 : vector<8x512xf32>
    %6 = arith.negf %5 : vector<8x512xf32>
    %7 = math.exp %6 : vector<8x512xf32>
    %cst_5 = arith.constant 1.000000e+00 : f32
    %8 = vector.broadcast %cst_5 : f32 to vector<8x512xf32>
    %9 = arith.addf %8, %7 : vector<8x512xf32>
    %10 = arith.divf %8, %9 : vector<8x512xf32>
    %11 = arith.mulf %5, %10 : vector<8x512xf32>
    %12 = arith.truncf %11 : vector<8x512xf32> to vector<8x512xbf16>
    %c0_6 = arith.constant 0 : index
    %c0_7 = arith.constant 0 : index
    %13 = vector.load %arg4[%c0_6, %c0_7] : memref<512x512xbf16, #tpu.memory_space<vmem>>, vector<512x512xbf16>
    %c0_8 = arith.constant 0 : index
    %c0_9 = arith.constant 0 : index
    %14 = vector.load %arg5[%c0_8, %c0_9] : memref<1x512xf32, #tpu.memory_space<vmem>>, vector<1x512xf32>
    %cst_10 = arith.constant dense<0.000000e+00> : vector<8x512xf32>
    %15 = tpu.matmul %12, %13, %cst_10 {dimension_numbers = #tpu.dot_dimension_numbers<[1], [0], [0], [1], [0, 0, 1, 1], [], []>} : vector<8x512xbf16>, vector<512x512xbf16>, vector<8x512xf32> -> vector<8x512xf32>
    %16 = vector.broadcast %14 : vector<1x512xf32> to vector<8x512xf32>
    %17 = arith.addf %15, %16 : vector<8x512xf32>
    %18 = arith.negf %17 : vector<8x512xf32>
    %19 = math.exp %18 : vector<8x512xf32>
    %cst_11 = arith.constant 1.000000e+00 : f32
    %20 = vector.broadcast %cst_11 : f32 to vector<8x512xf32>
    %21 = arith.addf %20, %19 : vector<8x512xf32>
    %22 = arith.divf %20, %21 : vector<8x512xf32>
    %23 = arith.mulf %17, %22 : vector<8x512xf32>
    %24 = arith.truncf %23 : vector<8x512xf32> to vector<8x512xbf16>
    %c0_12 = arith.constant 0 : index
    %c0_13 = arith.constant 0 : index
    %25 = vector.load %arg6[%c0_12, %c0_13] : memref<512x256xbf16, #tpu.memory_space<vmem>>, vector<512x256xbf16>
    %c0_14 = arith.constant 0 : index
    %c0_15 = arith.constant 0 : index
    %26 = vector.load %arg7[%c0_14, %c0_15] : memref<1x256xf32, #tpu.memory_space<vmem>>, vector<1x256xf32>
    %cst_16 = arith.constant dense<0.000000e+00> : vector<8x256xf32>
    %27 = tpu.matmul %24, %25, %cst_16 {dimension_numbers = #tpu.dot_dimension_numbers<[1], [0], [0], [1], [0, 0, 1, 1], [], []>} : vector<8x512xbf16>, vector<512x256xbf16>, vector<8x256xf32> -> vector<8x256xf32>
    %28 = vector.broadcast %26 : vector<1x256xf32> to vector<8x256xf32>
    %29 = arith.addf %27, %28 : vector<8x256xf32>
    %30 = arith.negf %29 : vector<8x256xf32>
    %31 = math.exp %30 : vector<8x256xf32>
    %cst_17 = arith.constant 1.000000e+00 : f32
    %32 = vector.broadcast %cst_17 : f32 to vector<8x256xf32>
    %33 = arith.addf %32, %31 : vector<8x256xf32>
    %34 = arith.divf %32, %33 : vector<8x256xf32>
    %35 = arith.mulf %29, %34 : vector<8x256xf32>
    %36 = arith.truncf %35 : vector<8x256xf32> to vector<8x256xbf16>
    %c0_18 = arith.constant 0 : index
    %c0_19 = arith.constant 0 : index
    %37 = vector.load %arg8[%c0_18, %c0_19] : memref<256x64xbf16, #tpu.memory_space<vmem>>, vector<256x64xbf16>
    %c0_20 = arith.constant 0 : index
    %c0_21 = arith.constant 0 : index
    %38 = vector.load %arg9[%c0_20, %c0_21] : memref<1x64xf32, #tpu.memory_space<vmem>>, vector<1x64xf32>
    %cst_22 = arith.constant dense<0.000000e+00> : vector<8x64xf32>
    %39 = tpu.matmul %36, %37, %cst_22 {dimension_numbers = #tpu.dot_dimension_numbers<[1], [0], [0], [1], [0, 0, 1, 1], [], []>} : vector<8x256xbf16>, vector<256x64xbf16>, vector<8x64xf32> -> vector<8x64xf32>
    %40 = vector.broadcast %38 : vector<1x64xf32> to vector<8x64xf32>
    %41 = arith.addf %39, %40 : vector<8x64xf32>
    %42 = arith.negf %41 : vector<8x64xf32>
    %43 = math.exp %42 : vector<8x64xf32>
    %cst_23 = arith.constant 1.000000e+00 : f32
    %44 = vector.broadcast %cst_23 : f32 to vector<8x64xf32>
    %45 = arith.addf %44, %43 : vector<8x64xf32>
    %46 = arith.divf %44, %45 : vector<8x64xf32>
    %47 = arith.mulf %41, %46 : vector<8x64xf32>
    %48 = arith.truncf %47 : vector<8x64xf32> to vector<8x64xbf16>
    %c0_24 = arith.constant 0 : index
    %c0_25 = arith.constant 0 : index
    %49 = vector.load %arg10[%c0_24, %c0_25] : memref<64x96xbf16, #tpu.memory_space<vmem>>, vector<64x96xbf16>
    %c0_26 = arith.constant 0 : index
    %c0_27 = arith.constant 0 : index
    %50 = vector.load %arg11[%c0_26, %c0_27] : memref<1x96xf32, #tpu.memory_space<vmem>>, vector<1x96xf32>
    %cst_28 = arith.constant dense<0.000000e+00> : vector<8x96xf32>
    %51 = tpu.matmul %48, %49, %cst_28 {dimension_numbers = #tpu.dot_dimension_numbers<[1], [0], [0], [1], [0, 0, 1, 1], [], []>} : vector<8x64xbf16>, vector<64x96xbf16>, vector<8x96xf32> -> vector<8x96xf32>
    %52 = vector.broadcast %50 : vector<1x96xf32> to vector<8x96xf32>
    %53 = arith.addf %51, %52 : vector<8x96xf32>
    %54 = arith.negf %53 : vector<8x96xf32>
    %55 = math.exp %54 : vector<8x96xf32>
    %cst_29 = arith.constant 1.000000e+00 : f32
    %56 = vector.broadcast %cst_29 : f32 to vector<8x96xf32>
    %57 = arith.addf %56, %55 : vector<8x96xf32>
    %58 = arith.divf %56, %57 : vector<8x96xf32>
    %59 = arith.mulf %53, %58 : vector<8x96xf32>
    %60 = arith.truncf %59 : vector<8x96xf32> to vector<8x96xbf16>
    %c0_30 = arith.constant 0 : index
    %c0_31 = arith.constant 0 : index
    %61 = vector.load %arg12[%c0_30, %c0_31] : memref<96x128xbf16, #tpu.memory_space<vmem>>, vector<96x128xbf16>
    %c0_32 = arith.constant 0 : index
    %c0_33 = arith.constant 0 : index
    %62 = vector.load %arg13[%c0_32, %c0_33] : memref<1x128xf32, #tpu.memory_space<vmem>>, vector<1x128xf32>
    %cst_34 = arith.constant dense<0.000000e+00> : vector<8x128xf32>
    %63 = tpu.matmul %60, %61, %cst_34 {dimension_numbers = #tpu.dot_dimension_numbers<[1], [0], [0], [1], [0, 0, 1, 1], [], []>} : vector<8x96xbf16>, vector<96x128xbf16>, vector<8x128xf32> -> vector<8x128xf32>
    %64 = vector.broadcast %62 : vector<1x128xf32> to vector<8x128xf32>
    %65 = arith.addf %63, %64 : vector<8x128xf32>
    %66 = arith.negf %65 : vector<8x128xf32>
    %67 = math.exp %66 : vector<8x128xf32>
    %cst_35 = arith.constant 1.000000e+00 : f32
    %68 = vector.broadcast %cst_35 : f32 to vector<8x128xf32>
    %69 = arith.addf %68, %67 : vector<8x128xf32>
    %70 = arith.divf %68, %69 : vector<8x128xf32>
    %71 = arith.mulf %65, %70 : vector<8x128xf32>
    %72 = arith.truncf %71 : vector<8x128xf32> to vector<8x128xbf16>
    %c0_36 = arith.constant 0 : index
    %c0_37 = arith.constant 0 : index
    %73 = vector.load %arg14[%c0_36, %c0_37] : memref<128x256xbf16, #tpu.memory_space<vmem>>, vector<128x256xbf16>
    %c0_38 = arith.constant 0 : index
    %c0_39 = arith.constant 0 : index
    %74 = vector.load %arg15[%c0_38, %c0_39] : memref<1x256xf32, #tpu.memory_space<vmem>>, vector<1x256xf32>
    %cst_40 = arith.constant dense<0.000000e+00> : vector<8x256xf32>
    %75 = tpu.matmul %72, %73, %cst_40 {dimension_numbers = #tpu.dot_dimension_numbers<[1], [0], [0], [1], [0, 0, 1, 1], [], []>} : vector<8x128xbf16>, vector<128x256xbf16>, vector<8x256xf32> -> vector<8x256xf32>
    %76 = vector.broadcast %74 : vector<1x256xf32> to vector<8x256xf32>
    %77 = arith.addf %75, %76 : vector<8x256xf32>
    %78 = arith.negf %77 : vector<8x256xf32>
    %79 = math.exp %78 : vector<8x256xf32>
    %cst_41 = arith.constant 1.000000e+00 : f32
    %80 = vector.broadcast %cst_41 : f32 to vector<8x256xf32>
    %81 = arith.addf %80, %79 : vector<8x256xf32>
    %82 = arith.divf %80, %81 : vector<8x256xf32>
    %83 = arith.mulf %77, %82 : vector<8x256xf32>
    %84 = arith.truncf %83 : vector<8x256xf32> to vector<8x256xbf16>
    %c0_42 = arith.constant 0 : index
    %c0_43 = arith.constant 0 : index
    %85 = vector.load %arg16[%c0_42, %c0_43] : memref<256x128xbf16, #tpu.memory_space<vmem>>, vector<256x128xbf16>
    %cst_44 = arith.constant dense<0.000000e+00> : vector<8x128xf32>
    %86 = tpu.matmul %84, %85, %cst_44 {dimension_numbers = #tpu.dot_dimension_numbers<[1], [0], [0], [1], [0, 0, 1, 1], [], []>} : vector<8x256xbf16>, vector<256x128xbf16>, vector<8x128xf32> -> vector<8x128xf32>
    %c0_45 = arith.constant 0 : index
    %c0_46 = arith.constant 0 : index
    %87 = vector.load %arg17[%c0_45, %c0_46] : memref<1x128xf32, #tpu.memory_space<vmem>>, vector<1x128xf32>
    %88 = vector.broadcast %87 : vector<1x128xf32> to vector<8x128xf32>
    %89 = arith.addf %86, %88 : vector<8x128xf32>
    %c0_47 = arith.constant 0 : index
    %c0_48 = arith.constant 0 : index
    %90 = vector.load %arg18[%c0_47, %c0_48] : memref<8x128xf32, #tpu.memory_space<vmem>>, vector<8x128xf32>
    tpu.vector_store %arg18[%c0_47, %c0_48], %89 {strides = array<i32>} : memref<8x128xf32, #tpu.memory_space<vmem>>, vector<8x128xf32>,
    return
  }
  func.func @transform_0(%arg0: i32) -> (i32, i32) {
    %c0_i32 = arith.constant 0 : i32
    %c0_i32_0 = arith.constant 0 : i32
    return %arg0, %c0_i32 : i32, i32
  }
  func.func @transform_1(%arg0: i32) -> (i32, i32) {
    %c0_i32 = arith.constant 0 : i32
    %c0_i32_0 = arith.constant 0 : i32
    %c0_i32_1 = arith.constant 0 : i32
    return %c0_i32, %c0_i32_0 : i32, i32
  }
  func.func @transform_2(%arg0: i32) -> (i32, i32) {
    %c0_i32 = arith.constant 0 : i32
    %c0_i32_0 = arith.constant 0 : i32
    %c0_i32_1 = arith.constant 0 : i32
    return %c0_i32, %c0_i32_0 : i32, i32
  }
  func.func @transform_3(%arg0: i32) -> (i32, i32) {
    %c0_i32 = arith.constant 0 : i32
    %c0_i32_0 = arith.constant 0 : i32
    %c0_i32_1 = arith.constant 0 : i32
    return %c0_i32, %c0_i32_0 : i32, i32
  }
  func.func @transform_4(%arg0: i32) -> (i32, i32) {
    %c0_i32 = arith.constant 0 : i32
    %c0_i32_0 = arith.constant 0 : i32
    %c0_i32_1 = arith.constant 0 : i32
    return %c0_i32, %c0_i32_0 : i32, i32
  }
  func.func @transform_5(%arg0: i32) -> (i32, i32) {
    %c0_i32 = arith.constant 0 : i32
    %c0_i32_0 = arith.constant 0 : i32
    %c0_i32_1 = arith.constant 0 : i32
    return %c0_i32, %c0_i32_0 : i32, i32
  }
  func.func @transform_6(%arg0: i32) -> (i32, i32) {
    %c0_i32 = arith.constant 0 : i32
    %c0_i32_0 = arith.constant 0 : i32
    %c0_i32_1 = arith.constant 0 : i32
    return %c0_i32, %c0_i32_0 : i32, i32
  }
  func.func @transform_7(%arg0: i32) -> (i32, i32) {
    %c0_i32 = arith.constant 0 : i32
    %c0_i32_0 = arith.constant 0 : i32
    %c0_i32_1 = arith.constant 0 : i32
    return %c0_i32, %c0_i32_0 : i32, i32
  }
  func.func @transform_8(%arg0: i32) -> (i32, i32) {
    %c0_i32 = arith.constant 0 : i32
    %c0_i32_0 = arith.constant 0 : i32
    %c0_i32_1 = arith.constant 0 : i32
    return %c0_i32, %c0_i32_0 : i32, i32
  }
  func.func @transform_9(%arg0: i32) -> (i32, i32) {
    %c0_i32 = arith.constant 0 : i32
    %c0_i32_0 = arith.constant 0 : i32
    %c0_i32_1 = arith.constant 0 : i32
    return %c0_i32, %c0_i32_0 : i32, i32
  }
  func.func @transform_10(%arg0: i32) -> (i32, i32) {
    %c0_i32 = arith.constant 0 : i32
    %c0_i32_0 = arith.constant 0 : i32
    %c0_i32_1 = arith.constant 0 : i32
    return %c0_i32, %c0_i32_0 : i32, i32
  }
  func.func @transform_11(%arg0: i32) -> (i32, i32) {
    %c0_i32 = arith.constant 0 : i32
    %c0_i32_0 = arith.constant 0 : i32
    %c0_i32_1 = arith.constant 0 : i32
    return %c0_i32, %c0_i32_0 : i32, i32
  }
  func.func @transform_12(%arg0: i32) -> (i32, i32) {
    %c0_i32 = arith.constant 0 : i32
    %c0_i32_0 = arith.constant 0 : i32
    %c0_i32_1 = arith.constant 0 : i32
    return %c0_i32, %c0_i32_0 : i32, i32
  }
  func.func @transform_13(%arg0: i32) -> (i32, i32) {
    %c0_i32 = arith.constant 0 : i32
    %c0_i32_0 = arith.constant 0 : i32
    %c0_i32_1 = arith.constant 0 : i32
    return %c0_i32, %c0_i32_0 : i32, i32
  }
  func.func @transform_14(%arg0: i32) -> (i32, i32) {
    %c0_i32 = arith.constant 0 : i32
    %c0_i32_0 = arith.constant 0 : i32
    %c0_i32_1 = arith.constant 0 : i32
    return %c0_i32, %c0_i32_0 : i32, i32
  }
  func.func @transform_15(%arg0: i32) -> (i32, i32) {
    %c0_i32 = arith.constant 0 : i32
    %c0_i32_0 = arith.constant 0 : i32
    %c0_i32_1 = arith.constant 0 : i32
    return %c0_i32, %c0_i32_0 : i32, i32
  }
  func.func @transform_16(%arg0: i32) -> (i32, i32) {
    %c0_i32 = arith.constant 0 : i32
    %c0_i32_0 = arith.constant 0 : i32
    %c0_i32_1 = arith.constant 0 : i32
    return %c0_i32, %c0_i32_0 : i32, i32
  }
  func.func @transform_17(%arg0: i32) -> (i32, i32) {
    %c0_i32 = arith.constant 0 : i32
    %c0_i32_0 = arith.constant 0 : i32
    return %arg0, %c0_i32 : i32, i32
  }
}

</mosaic_0001>

<bundles_post_ra>
// kernel: _forward.1
= control target key start
LH: loop header
LB: loop body
LE: loop exit
PB: predicated region body
PF: predicated region fallthrough
CT: control target
= control target key end

     0   :  { %vm5688_vm0 = vmmov 0   ;;  %vm3709_vm1 = vcmask 523264   ;;  %vm3816_vm2 = vcmask 785408   ;;  %s7396_s1 = inlined_call_operand.vmem [shape: bf16[1024,512], index: 1, kind: input, shape index: {}]   ;;  %s7397_s0 = inlined_call_operand.vmem [shape: bf16[8,1024], index: 0, kind: input, shape index: {}]   ;;  %s7398_s3 = inlined_call_operand.vmem [shape: bf16[512,512], index: 3, kind: input, shape index: {}]   ;;  %s7399_s5 = inlined_call_operand.vmem [shape: bf16[512,256], index: 5, kind: input, shape index: {}]   ;;  %s7400_s2 = inlined_call_operand.vmem [shape: f32[1,512], index: 2, kind: input, shape index: {}]   ;;  %s7401_s4 = inlined_call_operand.vmem [shape: f32[1,512], index: 4, kind: input, shape index: {}]   ;;  %s7402_s7 = inlined_call_operand.vmem [shape: bf16[256,64], index: 7, kind: input, shape index: {}]   ;;  %s7403_s6 = inlined_call_operand.vmem [shape: f32[1,256], index: 6, kind: input, shape index: {}]   ;;  %s7404_s9 = inlined_call_operand.vmem [shape: bf16[64,96], index: 9, kind: input, shape index: {}]   ;;  %s7405_s8 = inlined_call_operand.vmem [shape: f32[1,64], index: 8, kind: input, shape index: {}]   ;;  %s7406_s11 = inlined_call_operand.vmem [shape: bf16[96,128], index: 11, kind: input, shape index: {}]   ;;  %s7407_s10 = inlined_call_operand.vmem [shape: f32[1,96], index: 10, kind: input, shape index: {}]   ;;  %s7408_s13 = inlined_call_operand.vmem [shape: bf16[128,256], index: 13, kind: input, shape index: {}]   ;;  %s7409_s12 = inlined_call_operand.vmem [shape: f32[1,128], index: 12, kind: input, shape index: {}]   ;;  %s7410_s15 = inlined_call_operand.vmem [shape: bf16[256,128], index: 15, kind: input, shape index: {}]   ;;  %s7411_s14 = inlined_call_operand.vmem [shape: f32[1,256], index: 14, kind: input, shape index: {}]   ;;  %s7412_s16 = inlined_call_operand.vmem [shape: f32[1,128], index: 16, kind: input, shape index: {}]   ;;  %s7413_s17 = inlined_call_operand.vmem [shape: f32[8,128], index: 17, kind: output, shape index: {}]  }
   0x1   :  { %7416 = sst [smem:[#allocation2_spill]] %s7396_s1 }
   0x2   :  { %7417 = sst [smem:[#allocation3_spill]] %s7397_s0  ;;  %s7418_s26 = sld [smem:[#allocation2_spill]] }
   0x3   :  { %s7419_s20 = sld [smem:[#allocation3_spill]] }
   0x8   :  { %v4881_v0 = vld [vmem:[%s7418_s26 + $0x4] ss:$16 sps:$4 sm:$0xff]   ;;  %v4883_v1 = vld [vmem:[%s7418_s26 + $0xc] ss:$16 sps:$4 sm:$0xff]   ;;  %v4885_v2 = vld [vmem:[%s7418_s26] ss:$16 sps:$4 sm:$0xff]  }
   0x9   :  { %1647 = vmatprep.subr.bf16.mxu0 %v4881_v0  ;;  %v4886_v3 = vld [vmem:[%s7418_s26 + $0x8] ss:$16 sps:$4 sm:$0xff]   ;;  %1811 = vmatprep.subr.bf16.mxu1 %v4883_v1  ;;  %v4887_v4 = vld [vmem:[%s7418_s26 + $0x24] ss:$16 sps:$4 sm:$0xff]   ;;  %v4889_v5 = vld [vmem:[%s7418_s26 + $0x2c] ss:$16 sps:$4 sm:$0xff]  }
   0xa   :  { %1648 = vmatpush1.bf16.msra.mxu0 %v4885_v2  ;;  %1812 = vmatpush1.bf16.msra.mxu1 %v4886_v3  ;;  %v4891_v6 = vld [vmem:[%s7418_s26 + $0x20] ss:$16 sps:$4 sm:$0xff]   ;;  %v4892_v7 = vld [vmem:[%s7418_s26 + $0x28] ss:$16 sps:$4 sm:$0xff]   ;;  %v4893_v8 = vld [vmem:[%s7418_s26 + $0x44] ss:$16 sps:$4 sm:$0xff]  }
   0xb   :  { %1649 = vmatprep.subr.bf16.mxu0 %v4887_v4  ;;  %1813 = vmatprep.subr.bf16.mxu1 %v4889_v5  ;;  %v4895_v9 = vld [vmem:[%s7418_s26 + $0x4c] ss:$16 sps:$4 sm:$0xff]   ;;  %v4897_v10 = vld [vmem:[%s7418_s26 + $0x40] ss:$16 sps:$4 sm:$0xff]   ;;  %v4898_v11 = vld [vmem:[%s7418_s26 + $0x48] ss:$16 sps:$4 sm:$0xff]  }
   0xc   :  { %v4899_v12 = vld [vmem:[%s7418_s26 + $0x64] ss:$16 sps:$4 sm:$0xff]   ;;  %v4901_v13 = vld [vmem:[%s7418_s26 + $0x6c] ss:$16 sps:$4 sm:$0xff]   ;;  %v4903_v14 = vld [vmem:[%s7418_s26 + $0x60] ss:$16 sps:$4 sm:$0xff]  }
   0xd   :  { %v4904_v15 = vld [vmem:[%s7418_s26 + $0x68] ss:$16 sps:$4 sm:$0xff]   ;;  %v4905_v16 = vld [vmem:[%s7418_s26 + $0x84] ss:$16 sps:$4 sm:$0xff]   ;;  %v4907_v17 = vld [vmem:[%s7418_s26 + $0x8c] ss:$16 sps:$4 sm:$0xff]  }
   0xe   :  { %1650 = vmatpush1.bf16.msra.mxu0 %v4891_v6  ;;  %1814 = vmatpush1.bf16.msra.mxu1 %v4892_v7  ;;  %v4909_v18 = vld [vmem:[%s7418_s26 + $0x80] ss:$16 sps:$4 sm:$0xff]   ;;  %v4910_v19 = vld [vmem:[%s7418_s26 + $0x88] ss:$16 sps:$4 sm:$0xff]   ;;  %v4911_v20 = vld [vmem:[%s7418_s26 + $0xa4] ss:$16 sps:$4 sm:$0xff]  }
   0xf   :  { %1651 = vmatprep.subr.bf16.mxu0 %v4893_v8  ;;  %1815 = vmatprep.subr.bf16.mxu1 %v4895_v9  ;;  %v4913_v21 = vld [vmem:[%s7418_s26 + $0xac] ss:$16 sps:$4 sm:$0xff]   ;;  %v4915_v22 = vld [vmem:[%s7418_s26 + $0xa0] ss:$16 sps:$4 sm:$0xff]   ;;  %v4916_v23 = vld [vmem:[%s7418_s26 + $0xa8] ss:$16 sps:$4 sm:$0xff]  }
  0x10   :  { %v4917_v24 = vld [vmem:[%s7418_s26 + $0xc4] ss:$16 sps:$4 sm:$0xff]   ;;  %v4919_v25 = vld [vmem:[%s7418_s26 + $0xcc] ss:$16 sps:$4 sm:$0xff]   ;;  %v4921_v26 = vld [vmem:[%s7418_s26 + $0xc0] ss:$16 sps:$4 sm:$0xff]  }
  0x11   :  { %v4922_v27 = vld [vmem:[%s7418_s26 + $0xc8] ss:$16 sps:$4 sm:$0xff]   ;;  %v4923_v28 = vld [vmem:[%s7418_s26 + $0xe4] ss:$16 sps:$4 sm:$0xff]   ;;  %v4925_v29 = vld [vmem:[%s7418_s26 + $0xec] ss:$16 sps:$4 sm:$0xff]  }
  0x12   :  { %1652 = vmatpush1.bf16.msra.mxu0 %v4897_v10  ;;  %1816 = vmatpush1.bf16.msra.mxu1 %v4898_v11  ;;  %v4927_v30 = vld [vmem:[%s7418_s26 + $0xe0] ss:$16 sps:$4 sm:$0xff]   ;;  %v4928_v31 = vld [vmem:[%s7418_s26 + $0xe8] ss:$16 sps:$4 sm:$0xff]   ;;  %v4929_v32 = vld [vmem:[%s7418_s26 + $0x104] ss:$16 sps:$4 sm:$0xff]  }
  0x13   :  { %1653 = vmatprep.subr.bf16.mxu0 %v4899_v12  ;;  %1817 = vmatprep.subr.bf16.mxu1 %v4901_v13  ;;  %v4931_v33 = vld [vmem:[%s7418_s26 + $0x10c] ss:$16 sps:$4 sm:$0xff]   ;;  %v4933_v34 = vld [vmem:[%s7418_s26 + $0x100] ss:$16 sps:$4 sm:$0xff]   ;;  %v4934_v35 = vld [vmem:[%s7418_s26 + $0x108] ss:$16 sps:$4 sm:$0xff]  }
  0x14   :  { %v4935_v36 = vld [vmem:[%s7418_s26 + $0x124] ss:$16 sps:$4 sm:$0xff]   ;;  %v4937_v37 = vld [vmem:[%s7418_s26 + $0x12c] ss:$16 sps:$4 sm:$0xff]   ;;  %v4939_v38 = vld [vmem:[%s7418_s26 + $0x120] ss:$16 sps:$4 sm:$0xff]  }
  0x15   :  { %v4940_v39 = vld [vmem:[%s7418_s26 + $0x128] ss:$16 sps:$4 sm:$0xff]   ;;  %v4941_v40 = vld [vmem:[%s7418_s26 + $0x144] ss:$16 sps:$4 sm:$0xff]   ;;  %v4943_v41 = vld [vmem:[%s7418_s26 + $0x14c] ss:$16 sps:$4 sm:$0xff]  }
  0x16   :  { %1654 = vmatpush1.bf16.msra.mxu0 %v4903_v14  ;;  %1818 = vmatpush1.bf16.msra.mxu1 %v4904_v15  ;;  %v4945_v42 = vld [vmem:[%s7418_s26 + $0x140] ss:$16 sps:$4 sm:$0xff]   ;;  %v4946_v43 = vld [vmem:[%s7418_s26 + $0x148] ss:$16 sps:$4 sm:$0xff]   ;;  %v4947_v44 = vld [vmem:[%s7418_s26 + $0x164] ss:$16 sps:$4 sm:$0xff]  }
  0x17   :  { %1655 = vmatprep.subr.bf16.mxu0 %v4905_v16  ;;  %1819 = vmatprep.subr.bf16.mxu1 %v4907_v17  ;;  %v4949_v45 = vld [vmem:[%s7418_s26 + $0x16c] ss:$16 sps:$4 sm:$0xff]   ;;  %v57_v46 = vld [vmem:[%s7419_s20] sm:$0xff]  ;;  %v4952_v49 = vld [vmem:[%s7418_s26 + $0x168] ss:$16 sps:$4 sm:$0xff]  }
  0x18   :  { %v4951_v47 = vld [vmem:[%s7418_s26 + $0x160] ss:$16 sps:$4 sm:$0xff]   ;;  %v4214_v48 = vcombine.high %v57_v46, %v57_v46  ;;  %v4953_v50 = vld [vmem:[%s7418_s26 + $0x184] ss:$16 sps:$4 sm:$0xff]   ;;  %v4955_v51 = vld [vmem:[%s7418_s26 + $0x18c] ss:$16 sps:$4 sm:$0xff]   ;;  %v4213_v4 = vcombine.low %v57_v46, %v57_v46 }
  0x19   :  { %v4957_v52 = vld [vmem:[%s7418_s26 + $0x180] ss:$16 sps:$4 sm:$0xff]   ;;  %v4958_v53 = vld [vmem:[%s7418_s26 + $0x188] ss:$16 sps:$4 sm:$0xff]   ;;  %v4959_v54 = vld [vmem:[%s7418_s26 + $0x1a4] ss:$16 sps:$4 sm:$0xff]  }
  0x1a   :  { %1656 = vmatpush1.bf16.msra.mxu0 %v4909_v18  ;;  %1820 = vmatpush1.bf16.msra.mxu1 %v4910_v19  ;;  %v4961_v55 = vld [vmem:[%s7418_s26 + $0x1ac] ss:$16 sps:$4 sm:$0xff]   ;;  %v4963_v56 = vld [vmem:[%s7418_s26 + $0x1a0] ss:$16 sps:$4 sm:$0xff]   ;;  %v4964_v57 = vld [vmem:[%s7418_s26 + $0x1a8] ss:$16 sps:$4 sm:$0xff]  }
  0x1b   :  { %1657 = vmatprep.subr.bf16.mxu0 %v4911_v20  ;;  %1821 = vmatprep.subr.bf16.mxu1 %v4913_v21  ;;  %v4965_v58 = vld [vmem:[%s7418_s26 + $0x1c4] ss:$16 sps:$4 sm:$0xff]   ;;  %v4967_v59 = vld [vmem:[%s7418_s26 + $0x1cc] ss:$16 sps:$4 sm:$0xff]   ;;  %v4969_v60 = vld [vmem:[%s7418_s26 + $0x1c0] ss:$16 sps:$4 sm:$0xff]  }
  0x1c   :  { %1679 = vmatprep.mubr.bf16.mxu0 %v4214_v48  ;;  %1843 = vmatprep.mubr.bf16.mxu1 %v4214_v48  ;;  %v4970_v61 = vld [vmem:[%s7418_s26 + $0x1c8] ss:$16 sps:$4 sm:$0xff]   ;;  %v4971_v62 = vld [vmem:[%s7418_s26 + $0x1e4] ss:$16 sps:$4 sm:$0xff]   ;;  %v4973_v63 = vld [vmem:[%s7418_s26 + $0x1ec] ss:$16 sps:$4 sm:$0xff]  }
  0x1d   :  { %v4975_v0 = vld [vmem:[%s7418_s26 + $0x1e0] ss:$16 sps:$4 sm:$0xff]   ;;  %v4976_v1 = vld [vmem:[%s7418_s26 + $0x1e8] ss:$16 sps:$4 sm:$0xff]   ;;  %v4981_v2 = vld [vmem:[%s7418_s26 + $0x204] ss:$16 sps:$4 sm:$0xff]  }
  0x1e   :  { %1658 = vmatpush1.bf16.msra.mxu0 %v4915_v22  ;;  %1822 = vmatpush1.bf16.msra.mxu1 %v4916_v23  ;;  %v4984_v3 = vld [vmem:[%s7418_s26 + $0x20c] ss:$16 sps:$4 sm:$0xff]   ;;  %v4979_v5 = vld [vmem:[%s7418_s26 + $0x200] ss:$16 sps:$4 sm:$0xff]   ;;  %v4982_v6 = vld [vmem:[%s7418_s26 + $0x208] ss:$16 sps:$4 sm:$0xff]  }
  0x1f   :  { %1659 = vmatprep.subr.bf16.mxu0 %v4917_v24  ;;  %1823 = vmatprep.subr.bf16.mxu1 %v4919_v25  ;;  %v4987_v7 = vld [vmem:[%s7418_s26 + $0x224] ss:$16 sps:$4 sm:$0xff]   ;;  %v4990_v8 = vld [vmem:[%s7418_s26 + $0x22c] ss:$16 sps:$4 sm:$0xff]   ;;  %v4985_v9 = vld [vmem:[%s7418_s26 + $0x220] ss:$16 sps:$4 sm:$0xff]  }
  0x20   :  { %v4988_v10 = vld [vmem:[%s7418_s26 + $0x228] ss:$16 sps:$4 sm:$0xff]   ;;  %v4993_v11 = vld [vmem:[%s7418_s26 + $0x244] ss:$16 sps:$4 sm:$0xff]   ;;  %v4996_v12 = vld [vmem:[%s7418_s26 + $0x24c] ss:$16 sps:$4 sm:$0xff]  }
  0x21   :  { %v4991_v13 = vld [vmem:[%s7418_s26 + $0x240] ss:$16 sps:$4 sm:$0xff]   ;;  %v4994_v14 = vld [vmem:[%s7418_s26 + $0x248] ss:$16 sps:$4 sm:$0xff]   ;;  %v4999_v15 = vld [vmem:[%s7418_s26 + $0x264] ss:$16 sps:$4 sm:$0xff]  }
  0x22   :  { %1660 = vmatpush1.bf16.msra.mxu0 %v4921_v26  ;;  %1824 = vmatpush1.bf16.msra.mxu1 %v4922_v27  ;;  %v5002_v16 = vld [vmem:[%s7418_s26 + $0x26c] ss:$16 sps:$4 sm:$0xff]   ;;  %v4997_v17 = vld [vmem:[%s7418_s26 + $0x260] ss:$16 sps:$4 sm:$0xff]   ;;  %v5000_v18 = vld [vmem:[%s7418_s26 + $0x268] ss:$16 sps:$4 sm:$0xff]  }
  0x23   :  { %1661 = vmatprep.subr.bf16.mxu0 %v4923_v28  ;;  %1825 = vmatprep.subr.bf16.mxu1 %v4925_v29  ;;  %v5005_v19 = vld [vmem:[%s7418_s26 + $0x284] ss:$16 sps:$4 sm:$0xff]   ;;  %v5008_v20 = vld [vmem:[%s7418_s26 + $0x28c] ss:$16 sps:$4 sm:$0xff]   ;;  %v5003_v21 = vld [vmem:[%s7418_s26 + $0x280] ss:$16 sps:$4 sm:$0xff]  }
  0x24   :  { %v5006_v22 = vld [vmem:[%s7418_s26 + $0x288] ss:$16 sps:$4 sm:$0xff]   ;;  %v5011_v23 = vld [vmem:[%s7418_s26 + $0x2a4] ss:$16 sps:$4 sm:$0xff]   ;;  %v5014_v24 = vld [vmem:[%s7418_s26 + $0x2ac] ss:$16 sps:$4 sm:$0xff]  }
  0x25   :  { %v5009_v25 = vld [vmem:[%s7418_s26 + $0x2a0] ss:$16 sps:$4 sm:$0xff]   ;;  %v5012_v26 = vld [vmem:[%s7418_s26 + $0x2a8] ss:$16 sps:$4 sm:$0xff]   ;;  %v5017_v27 = vld [vmem:[%s7418_s26 + $0x2c4] ss:$16 sps:$4 sm:$0xff]  }
  0x26   :  { %1662 = vmatpush1.bf16.msra.mxu0 %v4927_v30  ;;  %1826 = vmatpush1.bf16.msra.mxu1 %v4928_v31  ;;  %v5020_v28 = vld [vmem:[%s7418_s26 + $0x2cc] ss:$16 sps:$4 sm:$0xff]   ;;  %v5015_v31 = vld [vmem:[%s7418_s26 + $0x2c0] ss:$16 sps:$4 sm:$0xff]   ;;  %v5042_v48 = vld [vmem:[%s7418_s26 + $0x348] ss:$16 sps:$4 sm:$0xff]  }
  0x27   :  { %1663 = vmatprep.subr.bf16.mxu0 %v4929_v32  ;;  %1827 = vmatprep.subr.bf16.mxu1 %v4931_v33  ;;  %v6056_v29 = vld [vmem:[%s7419_s20 + $0x8] sm:$0xff]  ;;  %v5023_v33 = vld [vmem:[%s7418_s26 + $0x2e4] ss:$16 sps:$4 sm:$0xff]  }
  0x28   :  { %v4216_v30 = vcombine.high %v6056_v29, %v6056_v29  ;;  %v5018_v32 = vld [vmem:[%s7418_s26 + $0x2c8] ss:$16 sps:$4 sm:$0xff]   ;;  %v5044_v46 = vld [vmem:[%s7418_s26 + $0x34c] ss:$16 sps:$4 sm:$0xff]  }
  0x2a   :  { %1664 = vmatpush1.bf16.msra.mxu0 %v4933_v34  ;;  %1828 = vmatpush1.bf16.msra.mxu1 %v4934_v35  ;;  %v5026_v34 = vld [vmem:[%s7418_s26 + $0x2ec] ss:$16 sps:$4 sm:$0xff]   ;;  %v5021_v35 = vld [vmem:[%s7418_s26 + $0x2e0] ss:$16 sps:$4 sm:$0xff]  }
  0x2b   :  { %1665 = vmatprep.subr.bf16.mxu0 %v4935_v36  ;;  %1829 = vmatprep.subr.bf16.mxu1 %v4937_v37  ;;  %v5024_v36 = vld [vmem:[%s7418_s26 + $0x2e8] ss:$16 sps:$4 sm:$0xff]   ;;  %v5029_v37 = vld [vmem:[%s7418_s26 + $0x304] ss:$16 sps:$4 sm:$0xff]  }
  0x2e   :  { %1666 = vmatpush1.bf16.msra.mxu0 %v4939_v38  ;;  %1830 = vmatpush1.bf16.msra.mxu1 %v4940_v39  ;;  %v5032_v38 = vld [vmem:[%s7418_s26 + $0x30c] ss:$16 sps:$4 sm:$0xff]   ;;  %v5027_v39 = vld [vmem:[%s7418_s26 + $0x300] ss:$16 sps:$4 sm:$0xff]  }
  0x2f   :  { %1667 = vmatprep.subr.bf16.mxu0 %v4941_v40  ;;  %1831 = vmatprep.subr.bf16.mxu1 %v4943_v41  ;;  %v5030_v40 = vld [vmem:[%s7418_s26 + $0x308] ss:$16 sps:$4 sm:$0xff]   ;;  %v5035_v41 = vld [vmem:[%s7418_s26 + $0x324] ss:$16 sps:$4 sm:$0xff]  }
  0x32   :  { %1668 = vmatpush1.bf16.msra.mxu0 %v4945_v42  ;;  %1832 = vmatpush1.bf16.msra.mxu1 %v4946_v43  ;;  %v5038_v42 = vld [vmem:[%s7418_s26 + $0x32c] ss:$16 sps:$4 sm:$0xff]   ;;  %v5033_v43 = vld [vmem:[%s7418_s26 + $0x320] ss:$16 sps:$4 sm:$0xff]  }
  0x33   :  { %1669 = vmatprep.subr.bf16.mxu0 %v4947_v44  ;;  %1833 = vmatprep.subr.bf16.mxu1 %v4949_v45  ;;  %v5036_v44 = vld [vmem:[%s7418_s26 + $0x328] ss:$16 sps:$4 sm:$0xff]   ;;  %v5041_v45 = vld [vmem:[%s7418_s26 + $0x344] ss:$16 sps:$4 sm:$0xff]  }
  0x36   :  { %1670 = vmatpush1.bf16.msra.mxu0 %v4951_v47  ;;  %1834 = vmatpush1.bf16.msra.mxu1 %v4952_v49  ;;  %v5039_v47 = vld [vmem:[%s7418_s26 + $0x340] ss:$16 sps:$4 sm:$0xff]   ;;  %v5047_v49 = vld [vmem:[%s7418_s26 + $0x364] ss:$16 sps:$4 sm:$0xff]  }
  0x37   :  { %1671 = vmatprep.subr.bf16.mxu0 %v4953_v50  ;;  %1835 = vmatprep.subr.bf16.mxu1 %v4955_v51  ;;  %v5050_v50 = vld [vmem:[%s7418_s26 + $0x36c] ss:$16 sps:$4 sm:$0xff]   ;;  %v5045_v51 = vld [vmem:[%s7418_s26 + $0x360] ss:$16 sps:$4 sm:$0xff]  }
  0x3a   :  { %1672 = vmatpush1.bf16.msra.mxu0 %v4957_v52  ;;  %1836 = vmatpush1.bf16.msra.mxu1 %v4958_v53  ;;  %v5048_v52 = vld [vmem:[%s7418_s26 + $0x368] ss:$16 sps:$4 sm:$0xff]   ;;  %v5053_v53 = vld [vmem:[%s7418_s26 + $0x384] ss:$16 sps:$4 sm:$0xff]  }
  0x3b   :  { %1673 = vmatprep.subr.bf16.mxu0 %v4959_v54  ;;  %1837 = vmatprep.subr.bf16.mxu1 %v4961_v55  ;;  %v5056_v54 = vld [vmem:[%s7418_s26 + $0x38c] ss:$16 sps:$4 sm:$0xff]   ;;  %v5051_v55 = vld [vmem:[%s7418_s26 + $0x380] ss:$16 sps:$4 sm:$0xff]  }
  0x3e   :  { %1674 = vmatpush1.bf16.msra.mxu0 %v4963_v56  ;;  %1838 = vmatpush1.bf16.msra.mxu1 %v4964_v57  ;;  %v5054_v56 = vld [vmem:[%s7418_s26 + $0x388] ss:$16 sps:$4 sm:$0xff]   ;;  %v5059_v57 = vld [vmem:[%s7418_s26 + $0x3a4] ss:$16 sps:$4 sm:$0xff]  }
  0x3f   :  { %1675 = vmatprep.subr.bf16.mxu0 %v4965_v58  ;;  %1839 = vmatprep.subr.bf16.mxu1 %v4967_v59  ;;  %v5062_v58 = vld [vmem:[%s7418_s26 + $0x3ac] ss:$16 sps:$4 sm:$0xff]   ;;  %v5057_v59 = vld [vmem:[%s7418_s26 + $0x3a0] ss:$16 sps:$4 sm:$0xff]  }
  0x42   :  { %1676 = vmatpush1.bf16.msra.mxu0 %v4969_v60  ;;  %1840 = vmatpush1.bf16.msra.mxu1 %v4970_v61  ;;  %v5060_v60 = vld [vmem:[%s7418_s26 + $0x3a8] ss:$16 sps:$4 sm:$0xff]   ;;  %v5065_v61 = vld [vmem:[%s7418_s26 + $0x3c4] ss:$16 sps:$4 sm:$0xff]  }
  0x43   :  { %1677 = vmatprep.subr.bf16.mxu0 %v4971_v62  ;;  %1841 = vmatprep.subr.bf16.mxu1 %v4973_v63  ;;  %v5068_v62 = vld [vmem:[%s7418_s26 + $0x3cc] ss:$16 sps:$4 sm:$0xff]   ;;  %v5063_v63 = vld [vmem:[%s7418_s26 + $0x3c0] ss:$16 sps:$4 sm:$0xff]  }
  0x46   :  { %1678 = vmatpush1.bf16.msra.mxu0 %v4975_v0  ;;  %1842 = vmatpush1.bf16.msra.mxu1 %v4976_v1  ;;  %v5066_v0 = vld [vmem:[%s7418_s26 + $0x3c8] ss:$16 sps:$4 sm:$0xff]   ;;  %v5071_v1 = vld [vmem:[%s7418_s26 + $0x3e4] ss:$16 sps:$4 sm:$0xff]  }
  0x47   :  { %1688 = vmatprep.subr.bf16.mxu0 %v4981_v2  ;;  %1852 = vmatprep.subr.bf16.mxu1 %v4984_v3  ;;  %v5074_v2 = vld [vmem:[%s7418_s26 + $0x3ec] ss:$16 sps:$4 sm:$0xff]   ;;  %v5069_v3 = vld [vmem:[%s7418_s26 + $0x3e0] ss:$16 sps:$4 sm:$0xff]  }
  0x49   :  { %1680 = vmatmul.mubr.bf16.vlgmr.msra.gmra.mrb[0].mxu0 %v4213_v4  ;;  %1844 = vmatmul.mubr.bf16.vlgmr.msra.gmra.mrb[0].mxu1 %v4213_v4  ;;  %v5072_v4 = vld [vmem:[%s7418_s26 + $0x3e8] ss:$16 sps:$4 sm:$0xff]  }
  0x4a   :  { %1689 = vmatpush1.bf16.msra.mxu0 %v4979_v5  ;;  %1853 = vmatpush1.bf16.msra.mxu1 %v4982_v6  ;;  %v5079_v5 = vld [vmem:[%s7418_s26 + $0x404] ss:$16 sps:$4 sm:$0xff]   ;;  %v5082_v6 = vld [vmem:[%s7418_s26 + $0x40c] ss:$16 sps:$4 sm:$0xff]  }
  0x4b   :  { %1690 = vmatprep.subr.bf16.mxu0 %v4987_v7  ;;  %1854 = vmatprep.subr.bf16.mxu1 %v4990_v8  ;;  %v4215_v7 = vcombine.low %v6056_v29, %v6056_v29  ;;  %v5077_v8 = vld [vmem:[%s7418_s26 + $0x400] ss:$16 sps:$4 sm:$0xff]   ;;  %v5112_v29 = vld [vmem:[%s7418_s26 + $0x4ac] ss:$16 sps:$4 sm:$0xff]  }
  0x4c   :  { %1720 = vmatprep.mubr.bf16.mxu0 %v4216_v30  ;;  %1884 = vmatprep.mubr.bf16.mxu1 %v4216_v30  ;;  %v5107_v30 = vld [vmem:[%s7418_s26 + $0x4a0] ss:$16 sps:$4 sm:$0xff]  }
  0x4e   :  { %1691 = vmatpush1.bf16.msra.mxu0 %v4985_v9  ;;  %1855 = vmatpush1.bf16.msra.mxu1 %v4988_v10  ;;  %v5080_v9 = vld [vmem:[%s7418_s26 + $0x408] ss:$16 sps:$4 sm:$0xff]   ;;  %v5085_v10 = vld [vmem:[%s7418_s26 + $0x424] ss:$16 sps:$4 sm:$0xff]  }
  0x4f   :  { %1692 = vmatprep.subr.bf16.mxu0 %v4993_v11  ;;  %1856 = vmatprep.subr.bf16.mxu1 %v4996_v12  ;;  %v6194_v11 = vld [vmem:[%s7419_s20 + $0x10] sm:$0xff]  ;;  %v5088_v12 = vld [vmem:[%s7418_s26 + $0x42c] ss:$16 sps:$4 sm:$0xff]  }
  0x52   :  { %1693 = vmatpush1.bf16.msra.mxu0 %v4991_v13  ;;  %1857 = vmatpush1.bf16.msra.mxu1 %v4994_v14  ;;  %v4218_v13 = vcombine.high %v6194_v11, %v6194_v11  ;;  %v5083_v14 = vld [vmem:[%s7418_s26 + $0x420] ss:$16 sps:$4 sm:$0xff]  }
  0x53   :  { %1694 = vmatprep.subr.bf16.mxu0 %v4999_v15  ;;  %1858 = vmatprep.subr.bf16.mxu1 %v5002_v16  ;;  %v5086_v15 = vld [vmem:[%s7418_s26 + $0x428] ss:$16 sps:$4 sm:$0xff]   ;;  %v5091_v16 = vld [vmem:[%s7418_s26 + $0x444] ss:$16 sps:$4 sm:$0xff]  }
  0x56   :  { %1695 = vmatpush1.bf16.msra.mxu0 %v4997_v17  ;;  %1859 = vmatpush1.bf16.msra.mxu1 %v5000_v18  ;;  %v5094_v17 = vld [vmem:[%s7418_s26 + $0x44c] ss:$16 sps:$4 sm:$0xff]   ;;  %v5089_v18 = vld [vmem:[%s7418_s26 + $0x440] ss:$16 sps:$4 sm:$0xff]  }
  0x57   :  { %1696 = vmatprep.subr.bf16.mxu0 %v5005_v19  ;;  %1860 = vmatprep.subr.bf16.mxu1 %v5008_v20  ;;  %v5092_v19 = vld [vmem:[%s7418_s26 + $0x448] ss:$16 sps:$4 sm:$0xff]   ;;  %v5097_v20 = vld [vmem:[%s7418_s26 + $0x464] ss:$16 sps:$4 sm:$0xff]  }
  0x5a   :  { %1697 = vmatpush1.bf16.msra.mxu0 %v5003_v21  ;;  %1861 = vmatpush1.bf16.msra.mxu1 %v5006_v22  ;;  %v5100_v21 = vld [vmem:[%s7418_s26 + $0x46c] ss:$16 sps:$4 sm:$0xff]   ;;  %v5095_v22 = vld [vmem:[%s7418_s26 + $0x460] ss:$16 sps:$4 sm:$0xff]  }
  0x5b   :  { %1698 = vmatprep.subr.bf16.mxu0 %v5011_v23  ;;  %1862 = vmatprep.subr.bf16.mxu1 %v5014_v24  ;;  %v5098_v23 = vld [vmem:[%s7418_s26 + $0x468] ss:$16 sps:$4 sm:$0xff]   ;;  %v5103_v24 = vld [vmem:[%s7418_s26 + $0x484] ss:$16 sps:$4 sm:$0xff]  }
  0x5e   :  { %1699 = vmatpush1.bf16.msra.mxu0 %v5009_v25  ;;  %1863 = vmatpush1.bf16.msra.mxu1 %v5012_v26  ;;  %v5106_v25 = vld [vmem:[%s7418_s26 + $0x48c] ss:$16 sps:$4 sm:$0xff]   ;;  %v5101_v26 = vld [vmem:[%s7418_s26 + $0x480] ss:$16 sps:$4 sm:$0xff]  }
  0x5f   :  { %1700 = vmatprep.subr.bf16.mxu0 %v5017_v27  ;;  %1864 = vmatprep.subr.bf16.mxu1 %v5020_v28  ;;  %v5104_v27 = vld [vmem:[%s7418_s26 + $0x488] ss:$16 sps:$4 sm:$0xff]   ;;  %v5109_v28 = vld [vmem:[%s7418_s26 + $0x4a4] ss:$16 sps:$4 sm:$0xff]  }
  0x62   :  { %1701 = vmatpush1.bf16.msra.mxu0 %v5015_v31  ;;  %1865 = vmatpush1.bf16.msra.mxu1 %v5018_v32  ;;  %v5110_v31 = vld [vmem:[%s7418_s26 + $0x4a8] ss:$16 sps:$4 sm:$0xff]   ;;  %v5115_v32 = vld [vmem:[%s7418_s26 + $0x4c4] ss:$16 sps:$4 sm:$0xff]  }
  0x63   :  { %1702 = vmatprep.subr.bf16.mxu0 %v5023_v33  ;;  %1866 = vmatprep.subr.bf16.mxu1 %v5026_v34  ;;  %v5118_v33 = vld [vmem:[%s7418_s26 + $0x4cc] ss:$16 sps:$4 sm:$0xff]   ;;  %v5113_v34 = vld [vmem:[%s7418_s26 + $0x4c0] ss:$16 sps:$4 sm:$0xff]  }
  0x66   :  { %1703 = vmatpush1.bf16.msra.mxu0 %v5021_v35  ;;  %1867 = vmatpush1.bf16.msra.mxu1 %v5024_v36  ;;  %v5116_v35 = vld [vmem:[%s7418_s26 + $0x4c8] ss:$16 sps:$4 sm:$0xff]   ;;  %v5121_v36 = vld [vmem:[%s7418_s26 + $0x4e4] ss:$16 sps:$4 sm:$0xff]  }
  0x67   :  { %1704 = vmatprep.subr.bf16.mxu0 %v5029_v37  ;;  %1868 = vmatprep.subr.bf16.mxu1 %v5032_v38  ;;  %v5124_v37 = vld [vmem:[%s7418_s26 + $0x4ec] ss:$16 sps:$4 sm:$0xff]   ;;  %v5119_v38 = vld [vmem:[%s7418_s26 + $0x4e0] ss:$16 sps:$4 sm:$0xff]  }
  0x6a   :  { %1705 = vmatpush1.bf16.msra.mxu0 %v5027_v39  ;;  %1869 = vmatpush1.bf16.msra.mxu1 %v5030_v40  ;;  %v5122_v39 = vld [vmem:[%s7418_s26 + $0x4e8] ss:$16 sps:$4 sm:$0xff]   ;;  %v5127_v40 = vld [vmem:[%s7418_s26 + $0x504] ss:$16 sps:$4 sm:$0xff]  }
  0x6b   :  { %1706 = vmatprep.subr.bf16.mxu0 %v5035_v41  ;;  %1870 = vmatprep.subr.bf16.mxu1 %v5038_v42  ;;  %v5130_v41 = vld [vmem:[%s7418_s26 + $0x50c] ss:$16 sps:$4 sm:$0xff]   ;;  %v5125_v42 = vld [vmem:[%s7418_s26 + $0x500] ss:$16 sps:$4 sm:$0xff]  }
  0x6e   :  { %1707 = vmatpush1.bf16.msra.mxu0 %v5033_v43  ;;  %1871 = vmatpush1.bf16.msra.mxu1 %v5036_v44  ;;  %v5128_v43 = vld [vmem:[%s7418_s26 + $0x508] ss:$16 sps:$4 sm:$0xff]   ;;  %v5133_v44 = vld [vmem:[%s7418_s26 + $0x524] ss:$16 sps:$4 sm:$0xff]  }
  0x6f   :  { %1708 = vmatprep.subr.bf16.mxu0 %v5041_v45  ;;  %1872 = vmatprep.subr.bf16.mxu1 %v5044_v46  ;;  %v5136_v45 = vld [vmem:[%s7418_s26 + $0x52c] ss:$16 sps:$4 sm:$0xff]   ;;  %v5131_v46 = vld [vmem:[%s7418_s26 + $0x520] ss:$16 sps:$4 sm:$0xff]  }
  0x72   :  { %1709 = vmatpush1.bf16.msra.mxu0 %v5039_v47  ;;  %1873 = vmatpush1.bf16.msra.mxu1 %v5042_v48  ;;  %v5134_v47 = vld [vmem:[%s7418_s26 + $0x528] ss:$16 sps:$4 sm:$0xff]   ;;  %v5139_v48 = vld [vmem:[%s7418_s26 + $0x544] ss:$16 sps:$4 sm:$0xff]  }
  0x73   :  { %1710 = vmatprep.subr.bf16.mxu0 %v5047_v49  ;;  %1874 = vmatprep.subr.bf16.mxu1 %v5050_v50  ;;  %v5142_v49 = vld [vmem:[%s7418_s26 + $0x54c] ss:$16 sps:$4 sm:$0xff]   ;;  %v5137_v50 = vld [vmem:[%s7418_s26 + $0x540] ss:$16 sps:$4 sm:$0xff]  }
  0x76   :  { %1711 = vmatpush1.bf16.msra.mxu0 %v5045_v51  ;;  %1875 = vmatpush1.bf16.msra.mxu1 %v5048_v52  ;;  %v5140_v51 = vld [vmem:[%s7418_s26 + $0x548] ss:$16 sps:$4 sm:$0xff]   ;;  %v5145_v52 = vld [vmem:[%s7418_s26 + $0x564] ss:$16 sps:$4 sm:$0xff]  }
  0x77   :  { %1712 = vmatprep.subr.bf16.mxu0 %v5053_v53  ;;  %1876 = vmatprep.subr.bf16.mxu1 %v5056_v54  ;;  %v5148_v53 = vld [vmem:[%s7418_s26 + $0x56c] ss:$16 sps:$4 sm:$0xff]   ;;  %v5143_v54 = vld [vmem:[%s7418_s26 + $0x560] ss:$16 sps:$4 sm:$0xff]  }
  0x7a   :  { %1713 = vmatpush1.bf16.msra.mxu0 %v5051_v55  ;;  %1877 = vmatpush1.bf16.msra.mxu1 %v5054_v56  ;;  %v5146_v55 = vld [vmem:[%s7418_s26 + $0x568] ss:$16 sps:$4 sm:$0xff]   ;;  %v5151_v56 = vld [vmem:[%s7418_s26 + $0x584] ss:$16 sps:$4 sm:$0xff]  }
  0x7b   :  { %1714 = vmatprep.subr.bf16.mxu0 %v5059_v57  ;;  %1878 = vmatprep.subr.bf16.mxu1 %v5062_v58  ;;  %v5154_v57 = vld [vmem:[%s7418_s26 + $0x58c] ss:$16 sps:$4 sm:$0xff]   ;;  %v5149_v58 = vld [vmem:[%s7418_s26 + $0x580] ss:$16 sps:$4 sm:$0xff]  }
  0x7e   :  { %1715 = vmatpush1.bf16.msra.mxu0 %v5057_v59  ;;  %1879 = vmatpush1.bf16.msra.mxu1 %v5060_v60  ;;  %v5152_v59 = vld [vmem:[%s7418_s26 + $0x588] ss:$16 sps:$4 sm:$0xff]   ;;  %v5157_v60 = vld [vmem:[%s7418_s26 + $0x5a4] ss:$16 sps:$4 sm:$0xff]  }
  0x7f   :  { %1716 = vmatprep.subr.bf16.mxu0 %v5065_v61  ;;  %1880 = vmatprep.subr.bf16.mxu1 %v5068_v62  ;;  %v5160_v61 = vld [vmem:[%s7418_s26 + $0x5ac] ss:$16 sps:$4 sm:$0xff]   ;;  %v5155_v62 = vld [vmem:[%s7418_s26 + $0x5a0] ss:$16 sps:$4 sm:$0xff]  }
  0x82   :  { %1717 = vmatpush1.bf16.msra.mxu0 %v5063_v63  ;;  %1881 = vmatpush1.bf16.msra.mxu1 %v5066_v0  ;;  %v5158_v63 = vld [vmem:[%s7418_s26 + $0x5a8] ss:$16 sps:$4 sm:$0xff]   ;;  %v5163_v0 = vld [vmem:[%s7418_s26 + $0x5c4] ss:$16 sps:$4 sm:$0xff]  }
  0x83   :  { %1718 = vmatprep.subr.bf16.mxu0 %v5071_v1  ;;  %1882 = vmatprep.subr.bf16.mxu1 %v5074_v2  ;;  %v5166_v1 = vld [vmem:[%s7418_s26 + $0x5cc] ss:$16 sps:$4 sm:$0xff]   ;;  %v5161_v2 = vld [vmem:[%s7418_s26 + $0x5c0] ss:$16 sps:$4 sm:$0xff]  }
  0x86   :  { %1719 = vmatpush1.bf16.msra.mxu0 %v5069_v3  ;;  %1883 = vmatpush1.bf16.msra.mxu1 %v5072_v4  ;;  %v5164_v3 = vld [vmem:[%s7418_s26 + $0x5c8] ss:$16 sps:$4 sm:$0xff]   ;;  %v5169_v4 = vld [vmem:[%s7418_s26 + $0x5e4] ss:$16 sps:$4 sm:$0xff]  }
  0x87   :  { %1729 = vmatprep.subr.bf16.mxu0 %v5079_v5  ;;  %1893 = vmatprep.subr.bf16.mxu1 %v5082_v6  ;;  %v5172_v5 = vld [vmem:[%s7418_s26 + $0x5ec] ss:$16 sps:$4 sm:$0xff]   ;;  %v5167_v6 = vld [vmem:[%s7418_s26 + $0x5e0] ss:$16 sps:$4 sm:$0xff]  }
  0x89   :  { %1721 = vmatmul.mubr.bf16.vlgmr.msra.gmra.mrb[0].mxu0 %v4215_v7  ;;  %1885 = vmatmul.mubr.bf16.vlgmr.msra.gmra.mrb[0].mxu1 %v4215_v7  ;;  %v5170_v7 = vld [vmem:[%s7418_s26 + $0x5e8] ss:$16 sps:$4 sm:$0xff]  }
  0x8a   :  { %1730 = vmatpush1.bf16.msra.mxu0 %v5077_v8  ;;  %1894 = vmatpush1.bf16.msra.mxu1 %v5080_v9  ;;  %v5177_v8 = vld [vmem:[%s7418_s26 + $0x604] ss:$16 sps:$4 sm:$0xff]   ;;  %v5180_v9 = vld [vmem:[%s7418_s26 + $0x60c] ss:$16 sps:$4 sm:$0xff]  }
  0x8b   :  { %1731 = vmatprep.subr.bf16.mxu0 %v5085_v10  ;;  %1895 = vmatprep.subr.bf16.mxu1 %v5088_v12  ;;  %v4217_v10 = vcombine.low %v6194_v11, %v6194_v11  ;;  %v5175_v12 = vld [vmem:[%s7418_s26 + $0x600] ss:$16 sps:$4 sm:$0xff]   ;;  %v5183_v11 = vld [vmem:[%s7418_s26 + $0x624] ss:$16 sps:$4 sm:$0xff]  }
  0x8c   :  { %1761 = vmatprep.mubr.bf16.mxu0 %v4218_v13  ;;  %1925 = vmatprep.mubr.bf16.mxu1 %v4218_v13  ;;  %v6389_v13 = vld [vmem:[%s7419_s20 + $0x18] sm:$0xff] }
  0x8e   :  { %1732 = vmatpush1.bf16.msra.mxu0 %v5083_v14  ;;  %1896 = vmatpush1.bf16.msra.mxu1 %v5086_v15  ;;  %v5178_v14 = vld [vmem:[%s7418_s26 + $0x608] ss:$16 sps:$4 sm:$0xff]   ;;  %v5186_v15 = vld [vmem:[%s7418_s26 + $0x62c] ss:$16 sps:$4 sm:$0xff]  }
  0x8f   :  { %1733 = vmatprep.subr.bf16.mxu0 %v5091_v16  ;;  %1897 = vmatprep.subr.bf16.mxu1 %v5094_v17  ;;  %v5181_v16 = vld [vmem:[%s7418_s26 + $0x620] ss:$16 sps:$4 sm:$0xff]   ;;  %v5184_v17 = vld [vmem:[%s7418_s26 + $0x628] ss:$16 sps:$4 sm:$0xff]  }
  0x92   :  { %1734 = vmatpush1.bf16.msra.mxu0 %v5089_v18  ;;  %1898 = vmatpush1.bf16.msra.mxu1 %v5092_v19  ;;  %v4220_v18 = vcombine.high %v6389_v13, %v6389_v13  ;;  %v5189_v19 = vld [vmem:[%s7418_s26 + $0x644] ss:$16 sps:$4 sm:$0xff]  }
  0x93   :  { %1735 = vmatprep.subr.bf16.mxu0 %v5097_v20  ;;  %1899 = vmatprep.subr.bf16.mxu1 %v5100_v21  ;;  %v5192_v20 = vld [vmem:[%s7418_s26 + $0x64c] ss:$16 sps:$4 sm:$0xff]   ;;  %v5187_v21 = vld [vmem:[%s7418_s26 + $0x640] ss:$16 sps:$4 sm:$0xff]  }
  0x96   :  { %1736 = vmatpush1.bf16.msra.mxu0 %v5095_v22  ;;  %1900 = vmatpush1.bf16.msra.mxu1 %v5098_v23  ;;  %v5190_v22 = vld [vmem:[%s7418_s26 + $0x648] ss:$16 sps:$4 sm:$0xff]   ;;  %v5195_v23 = vld [vmem:[%s7418_s26 + $0x664] ss:$16 sps:$4 sm:$0xff]  }
  0x97   :  { %1737 = vmatprep.subr.bf16.mxu0 %v5103_v24  ;;  %1901 = vmatprep.subr.bf16.mxu1 %v5106_v25  ;;  %v5198_v24 = vld [vmem:[%s7418_s26 + $0x66c] ss:$16 sps:$4 sm:$0xff]   ;;  %v5193_v25 = vld [vmem:[%s7418_s26 + $0x660] ss:$16 sps:$4 sm:$0xff]  }
  0x9a   :  { %1738 = vmatpush1.bf16.msra.mxu0 %v5101_v26  ;;  %1902 = vmatpush1.bf16.msra.mxu1 %v5104_v27  ;;  %v5196_v26 = vld [vmem:[%s7418_s26 + $0x668] ss:$16 sps:$4 sm:$0xff]   ;;  %v5201_v27 = vld [vmem:[%s7418_s26 + $0x684] ss:$16 sps:$4 sm:$0xff]  }
  0x9b   :  { %1739 = vmatprep.subr.bf16.mxu0 %v5109_v28  ;;  %1903 = vmatprep.subr.bf16.mxu1 %v5112_v29  ;;  %v5204_v28 = vld [vmem:[%s7418_s26 + $0x68c] ss:$16 sps:$4 sm:$0xff]   ;;  %v5199_v29 = vld [vmem:[%s7418_s26 + $0x680] ss:$16 sps:$4 sm:$0xff]  }
  0x9e   :  { %1740 = vmatpush1.bf16.msra.mxu0 %v5107_v30  ;;  %1904 = vmatpush1.bf16.msra.mxu1 %v5110_v31  ;;  %v5202_v30 = vld [vmem:[%s7418_s26 + $0x688] ss:$16 sps:$4 sm:$0xff]   ;;  %v5207_v31 = vld [vmem:[%s7418_s26 + $0x6a4] ss:$16 sps:$4 sm:$0xff]  }
  0x9f   :  { %1741 = vmatprep.subr.bf16.mxu0 %v5115_v32  ;;  %1905 = vmatprep.subr.bf16.mxu1 %v5118_v33  ;;  %v5210_v32 = vld [vmem:[%s7418_s26 + $0x6ac] ss:$16 sps:$4 sm:$0xff]   ;;  %v5205_v33 = vld [vmem:[%s7418_s26 + $0x6a0] ss:$16 sps:$4 sm:$0xff]  }
  0xa2   :  { %1742 = vmatpush1.bf16.msra.mxu0 %v5113_v34  ;;  %1906 = vmatpush1.bf16.msra.mxu1 %v5116_v35  ;;  %v5208_v34 = vld [vmem:[%s7418_s26 + $0x6a8] ss:$16 sps:$4 sm:$0xff]   ;;  %v5213_v35 = vld [vmem:[%s7418_s26 + $0x6c4] ss:$16 sps:$4 sm:$0xff]  }
  0xa3   :  { %1743 = vmatprep.subr.bf16.mxu0 %v5121_v36  ;;  %1907 = vmatprep.subr.bf16.mxu1 %v5124_v37  ;;  %v5216_v36 = vld [vmem:[%s7418_s26 + $0x6cc] ss:$16 sps:$4 sm:$0xff]   ;;  %v5211_v37 = vld [vmem:[%s7418_s26 + $0x6c0] ss:$16 sps:$4 sm:$0xff]  }
  0xa6   :  { %1744 = vmatpush1.bf16.msra.mxu0 %v5119_v38  ;;  %1908 = vmatpush1.bf16.msra.mxu1 %v5122_v39  ;;  %v5214_v38 = vld [vmem:[%s7418_s26 + $0x6c8] ss:$16 sps:$4 sm:$0xff]   ;;  %v5219_v39 = vld [vmem:[%s7418_s26 + $0x6e4] ss:$16 sps:$4 sm:$0xff]  }
  0xa7   :  { %1745 = vmatprep.subr.bf16.mxu0 %v5127_v40  ;;  %1909 = vmatprep.subr.bf16.mxu1 %v5130_v41  ;;  %v5222_v40 = vld [vmem:[%s7418_s26 + $0x6ec] ss:$16 sps:$4 sm:$0xff]   ;;  %v5217_v41 = vld [vmem:[%s7418_s26 + $0x6e0] ss:$16 sps:$4 sm:$0xff]  }
  0xaa   :  { %1746 = vmatpush1.bf16.msra.mxu0 %v5125_v42  ;;  %1910 = vmatpush1.bf16.msra.mxu1 %v5128_v43  ;;  %v5220_v42 = vld [vmem:[%s7418_s26 + $0x6e8] ss:$16 sps:$4 sm:$0xff]   ;;  %v5225_v43 = vld [vmem:[%s7418_s26 + $0x704] ss:$16 sps:$4 sm:$0xff]  }
  0xab   :  { %1747 = vmatprep.subr.bf16.mxu0 %v5133_v44  ;;  %1911 = vmatprep.subr.bf16.mxu1 %v5136_v45  ;;  %v5228_v44 = vld [vmem:[%s7418_s26 + $0x70c] ss:$16 sps:$4 sm:$0xff]   ;;  %v5223_v45 = vld [vmem:[%s7418_s26 + $0x700] ss:$16 sps:$4 sm:$0xff]  }
  0xae   :  { %1748 = vmatpush1.bf16.msra.mxu0 %v5131_v46  ;;  %1912 = vmatpush1.bf16.msra.mxu1 %v5134_v47  ;;  %v5226_v46 = vld [vmem:[%s7418_s26 + $0x708] ss:$16 sps:$4 sm:$0xff]   ;;  %v5231_v47 = vld [vmem:[%s7418_s26 + $0x724] ss:$16 sps:$4 sm:$0xff]  }
  0xaf   :  { %1749 = vmatprep.subr.bf16.mxu0 %v5139_v48  ;;  %1913 = vmatprep.subr.bf16.mxu1 %v5142_v49  ;;  %v5234_v48 = vld [vmem:[%s7418_s26 + $0x72c] ss:$16 sps:$4 sm:$0xff]   ;;  %v5229_v49 = vld [vmem:[%s7418_s26 + $0x720] ss:$16 sps:$4 sm:$0xff]  }
  0xb2   :  { %1750 = vmatpush1.bf16.msra.mxu0 %v5137_v50  ;;  %1914 = vmatpush1.bf16.msra.mxu1 %v5140_v51  ;;  %v5232_v50 = vld [vmem:[%s7418_s26 + $0x728] ss:$16 sps:$4 sm:$0xff]   ;;  %v5237_v51 = vld [vmem:[%s7418_s26 + $0x744] ss:$16 sps:$4 sm:$0xff]  }
  0xb3   :  { %1751 = vmatprep.subr.bf16.mxu0 %v5145_v52  ;;  %1915 = vmatprep.subr.bf16.mxu1 %v5148_v53  ;;  %v5240_v52 = vld [vmem:[%s7418_s26 + $0x74c] ss:$16 sps:$4 sm:$0xff]   ;;  %v5235_v53 = vld [vmem:[%s7418_s26 + $0x740] ss:$16 sps:$4 sm:$0xff]  }
  0xb6   :  { %1752 = vmatpush1.bf16.msra.mxu0 %v5143_v54  ;;  %1916 = vmatpush1.bf16.msra.mxu1 %v5146_v55  ;;  %v5238_v54 = vld [vmem:[%s7418_s26 + $0x748] ss:$16 sps:$4 sm:$0xff]   ;;  %v5243_v55 = vld [vmem:[%s7418_s26 + $0x764] ss:$16 sps:$4 sm:$0xff]  }
  0xb7   :  { %1753 = vmatprep.subr.bf16.mxu0 %v5151_v56  ;;  %1917 = vmatprep.subr.bf16.mxu1 %v5154_v57  ;;  %v5246_v56 = vld [vmem:[%s7418_s26 + $0x76c] ss:$16 sps:$4 sm:$0xff]   ;;  %v5241_v57 = vld [vmem:[%s7418_s26 + $0x760] ss:$16 sps:$4 sm:$0xff]  }
  0xba   :  { %1754 = vmatpush1.bf16.msra.mxu0 %v5149_v58  ;;  %1918 = vmatpush1.bf16.msra.mxu1 %v5152_v59  ;;  %v5244_v58 = vld [vmem:[%s7418_s26 + $0x768] ss:$16 sps:$4 sm:$0xff]   ;;  %v5249_v59 = vld [vmem:[%s7418_s26 + $0x784] ss:$16 sps:$4 sm:$0xff]  }
  0xbb   :  { %1755 = vmatprep.subr.bf16.mxu0 %v5157_v60  ;;  %1919 = vmatprep.subr.bf16.mxu1 %v5160_v61  ;;  %v5252_v60 = vld [vmem:[%s7418_s26 + $0x78c] ss:$16 sps:$4 sm:$0xff]   ;;  %v5247_v61 = vld [vmem:[%s7418_s26 + $0x780] ss:$16 sps:$4 sm:$0xff]  }
  0xbe   :  { %1756 = vmatpush1.bf16.msra.mxu0 %v5155_v62  ;;  %1920 = vmatpush1.bf16.msra.mxu1 %v5158_v63  ;;  %v5250_v62 = vld [vmem:[%s7418_s26 + $0x788] ss:$16 sps:$4 sm:$0xff]   ;;  %v5255_v63 = vld [vmem:[%s7418_s26 + $0x7a4] ss:$16 sps:$4 sm:$0xff]  }
  0xbf   :  { %1757 = vmatprep.subr.bf16.mxu0 %v5163_v0  ;;  %1921 = vmatprep.subr.bf16.mxu1 %v5166_v1  ;;  %v5258_v0 = vld [vmem:[%s7418_s26 + $0x7ac] ss:$16 sps:$4 sm:$0xff]   ;;  %v5253_v1 = vld [vmem:[%s7418_s26 + $0x7a0] ss:$16 sps:$4 sm:$0xff]  }
  0xc2   :  { %1758 = vmatpush1.bf16.msra.mxu0 %v5161_v2  ;;  %1922 = vmatpush1.bf16.msra.mxu1 %v5164_v3  ;;  %v5256_v2 = vld [vmem:[%s7418_s26 + $0x7a8] ss:$16 sps:$4 sm:$0xff]   ;;  %v5261_v3 = vld [vmem:[%s7418_s26 + $0x7c4] ss:$16 sps:$4 sm:$0xff]  }
  0xc3   :  { %1759 = vmatprep.subr.bf16.mxu0 %v5169_v4  ;;  %1923 = vmatprep.subr.bf16.mxu1 %v5172_v5  ;;  %v5264_v4 = vld [vmem:[%s7418_s26 + $0x7cc] ss:$16 sps:$4 sm:$0xff]   ;;  %v5259_v5 = vld [vmem:[%s7418_s26 + $0x7c0] ss:$16 sps:$4 sm:$0xff]  }
  0xc6   :  { %1760 = vmatpush1.bf16.msra.mxu0 %v5167_v6  ;;  %1924 = vmatpush1.bf16.msra.mxu1 %v5170_v7  ;;  %v5262_v6 = vld [vmem:[%s7418_s26 + $0x7c8] ss:$16 sps:$4 sm:$0xff]   ;;  %v5267_v7 = vld [vmem:[%s7418_s26 + $0x7e4] ss:$16 sps:$4 sm:$0xff]  }
  0xc7   :  { %1770 = vmatprep.subr.bf16.mxu0 %v5177_v8  ;;  %1934 = vmatprep.subr.bf16.mxu1 %v5180_v9  ;;  %v5270_v8 = vld [vmem:[%s7418_s26 + $0x7ec] ss:$16 sps:$4 sm:$0xff]   ;;  %v5265_v9 = vld [vmem:[%s7418_s26 + $0x7e0] ss:$16 sps:$4 sm:$0xff]  }
  0xc9   :  { %1762 = vmatmul.mubr.bf16.vlgmr.msra.gmra.mrb[0].mxu0 %v4217_v10  ;;  %1926 = vmatmul.mubr.bf16.vlgmr.msra.gmra.mrb[0].mxu1 %v4217_v10  ;;  %v5268_v10 = vld [vmem:[%s7418_s26 + $0x7e8] ss:$16 sps:$4 sm:$0xff]  }
  0xca   :  { %1771 = vmatpush1.bf16.msra.mxu0 %v5175_v12  ;;  %1935 = vmatpush1.bf16.msra.mxu1 %v5178_v14  ;;  %v5275_v12 = vld [vmem:[%s7398_s3 + $0x4] ss:$16 sps:$4 sm:$0xff]   ;;  %v5278_v14 = vld [vmem:[%s7398_s3 + $0xc] ss:$16 sps:$4 sm:$0xff]  }
  0xcb   :  { %1772 = vmatprep.subr.bf16.mxu0 %v5183_v11  ;;  %1936 = vmatprep.subr.bf16.mxu1 %v5186_v15  ;;  %v4219_v11 = vcombine.low %v6389_v13, %v6389_v13  ;;  %v5273_v15 = vld [vmem:[%s7398_s3] ss:$16 sps:$4 sm:$0xff]   ;;  %v5284_v13 = vld [vmem:[%s7398_s3 + $0x2c] ss:$16 sps:$4 sm:$0xff]  }
  0xcc   :  { %1802 = vmatprep.mubr.bf16.mxu0 %v4220_v18  ;;  %1966 = vmatprep.mubr.bf16.mxu1 %v4220_v18  ;;  %v5279_v18 = vld [vmem:[%s7398_s3 + $0x20] ss:$16 sps:$4 sm:$0xff]  }
  0xce   :  { %1773 = vmatpush1.bf16.msra.mxu0 %v5181_v16  ;;  %1937 = vmatpush1.bf16.msra.mxu1 %v5184_v17  ;;  %v5276_v16 = vld [vmem:[%s7398_s3 + $0x8] ss:$16 sps:$4 sm:$0xff]   ;;  %v5281_v17 = vld [vmem:[%s7398_s3 + $0x24] ss:$16 sps:$4 sm:$0xff]  }
  0xcf   :  { %1774 = vmatprep.subr.bf16.mxu0 %v5189_v19  ;;  %1938 = vmatprep.subr.bf16.mxu1 %v5192_v20  ;;  %v5282_v19 = vld [vmem:[%s7398_s3 + $0x28] ss:$16 sps:$4 sm:$0xff]   ;;  %v5287_v20 = vld [vmem:[%s7398_s3 + $0x44] ss:$16 sps:$4 sm:$0xff]  }
  0xd2   :  { %1775 = vmatpush1.bf16.msra.mxu0 %v5187_v21  ;;  %1939 = vmatpush1.bf16.msra.mxu1 %v5190_v22  ;;  %v5290_v21 = vld [vmem:[%s7398_s3 + $0x4c] ss:$16 sps:$4 sm:$0xff]   ;;  %v5285_v22 = vld [vmem:[%s7398_s3 + $0x40] ss:$16 sps:$4 sm:$0xff]  }
  0xd3   :  { %1776 = vmatprep.subr.bf16.mxu0 %v5195_v23  ;;  %1940 = vmatprep.subr.bf16.mxu1 %v5198_v24  ;;  %v5288_v23 = vld [vmem:[%s7398_s3 + $0x48] ss:$16 sps:$4 sm:$0xff]   ;;  %v5293_v24 = vld [vmem:[%s7398_s3 + $0x64] ss:$16 sps:$4 sm:$0xff]  }
  0xd6   :  { %1777 = vmatpush1.bf16.msra.mxu0 %v5193_v25  ;;  %1941 = vmatpush1.bf16.msra.mxu1 %v5196_v26  ;;  %v5296_v25 = vld [vmem:[%s7398_s3 + $0x6c] ss:$16 sps:$4 sm:$0xff]   ;;  %v5291_v26 = vld [vmem:[%s7398_s3 + $0x60] ss:$16 sps:$4 sm:$0xff]  }
  0xd7   :  { %1778 = vmatprep.subr.bf16.mxu0 %v5201_v27  ;;  %1942 = vmatprep.subr.bf16.mxu1 %v5204_v28  ;;  %v5294_v27 = vld [vmem:[%s7398_s3 + $0x68] ss:$16 sps:$4 sm:$0xff]   ;;  %v5299_v28 = vld [vmem:[%s7398_s3 + $0x84] ss:$16 sps:$4 sm:$0xff]  }
  0xda   :  { %1779 = vmatpush1.bf16.msra.mxu0 %v5199_v29  ;;  %1943 = vmatpush1.bf16.msra.mxu1 %v5202_v30  ;;  %v5302_v29 = vld [vmem:[%s7398_s3 + $0x8c] ss:$16 sps:$4 sm:$0xff]   ;;  %v5297_v30 = vld [vmem:[%s7398_s3 + $0x80] ss:$16 sps:$4 sm:$0xff]  }
  0xdb   :  { %1780 = vmatprep.subr.bf16.mxu0 %v5207_v31  ;;  %1944 = vmatprep.subr.bf16.mxu1 %v5210_v32  ;;  %v5300_v31 = vld [vmem:[%s7398_s3 + $0x88] ss:$16 sps:$4 sm:$0xff]   ;;  %v5305_v32 = vld [vmem:[%s7398_s3 + $0xa4] ss:$16 sps:$4 sm:$0xff]  }
  0xde   :  { %1781 = vmatpush1.bf16.msra.mxu0 %v5205_v33  ;;  %1945 = vmatpush1.bf16.msra.mxu1 %v5208_v34  ;;  %v5308_v33 = vld [vmem:[%s7398_s3 + $0xac] ss:$16 sps:$4 sm:$0xff]   ;;  %v5303_v34 = vld [vmem:[%s7398_s3 + $0xa0] ss:$16 sps:$4 sm:$0xff]  }
  0xdf   :  { %1782 = vmatprep.subr.bf16.mxu0 %v5213_v35  ;;  %1946 = vmatprep.subr.bf16.mxu1 %v5216_v36  ;;  %v5306_v35 = vld [vmem:[%s7398_s3 + $0xa8] ss:$16 sps:$4 sm:$0xff]   ;;  %v5311_v36 = vld [vmem:[%s7398_s3 + $0xc4] ss:$16 sps:$4 sm:$0xff]  }
  0xe2   :  { %1783 = vmatpush1.bf16.msra.mxu0 %v5211_v37  ;;  %1947 = vmatpush1.bf16.msra.mxu1 %v5214_v38  ;;  %v5314_v37 = vld [vmem:[%s7398_s3 + $0xcc] ss:$16 sps:$4 sm:$0xff]   ;;  %v5309_v38 = vld [vmem:[%s7398_s3 + $0xc0] ss:$16 sps:$4 sm:$0xff]  }
  0xe3   :  { %1784 = vmatprep.subr.bf16.mxu0 %v5219_v39  ;;  %1948 = vmatprep.subr.bf16.mxu1 %v5222_v40  ;;  %v5312_v39 = vld [vmem:[%s7398_s3 + $0xc8] ss:$16 sps:$4 sm:$0xff]   ;;  %v5317_v40 = vld [vmem:[%s7398_s3 + $0xe4] ss:$16 sps:$4 sm:$0xff]  }
  0xe6   :  { %1785 = vmatpush1.bf16.msra.mxu0 %v5217_v41  ;;  %1949 = vmatpush1.bf16.msra.mxu1 %v5220_v42  ;;  %v5320_v41 = vld [vmem:[%s7398_s3 + $0xec] ss:$16 sps:$4 sm:$0xff]   ;;  %v5315_v42 = vld [vmem:[%s7398_s3 + $0xe0] ss:$16 sps:$4 sm:$0xff]  }
  0xe7   :  { %1786 = vmatprep.subr.bf16.mxu0 %v5225_v43  ;;  %1950 = vmatprep.subr.bf16.mxu1 %v5228_v44  ;;  %v5318_v43 = vld [vmem:[%s7398_s3 + $0xe8] ss:$16 sps:$4 sm:$0xff]   ;;  %v5323_v44 = vld [vmem:[%s7398_s3 + $0x104] ss:$16 sps:$4 sm:$0xff]  }
  0xea   :  { %1787 = vmatpush1.bf16.msra.mxu0 %v5223_v45  ;;  %1951 = vmatpush1.bf16.msra.mxu1 %v5226_v46  ;;  %v5326_v45 = vld [vmem:[%s7398_s3 + $0x10c] ss:$16 sps:$4 sm:$0xff]   ;;  %v5321_v46 = vld [vmem:[%s7398_s3 + $0x100] ss:$16 sps:$4 sm:$0xff]  }
  0xeb   :  { %1788 = vmatprep.subr.bf16.mxu0 %v5231_v47  ;;  %1952 = vmatprep.subr.bf16.mxu1 %v5234_v48  ;;  %v5324_v47 = vld [vmem:[%s7398_s3 + $0x108] ss:$16 sps:$4 sm:$0xff]   ;;  %v5329_v48 = vld [vmem:[%s7398_s3 + $0x124] ss:$16 sps:$4 sm:$0xff]  }
  0xee   :  { %1789 = vmatpush1.bf16.msra.mxu0 %v5229_v49  ;;  %1953 = vmatpush1.bf16.msra.mxu1 %v5232_v50  ;;  %v5332_v49 = vld [vmem:[%s7398_s3 + $0x12c] ss:$16 sps:$4 sm:$0xff]   ;;  %v5327_v50 = vld [vmem:[%s7398_s3 + $0x120] ss:$16 sps:$4 sm:$0xff]  }
  0xef   :  { %1790 = vmatprep.subr.bf16.mxu0 %v5237_v51  ;;  %1954 = vmatprep.subr.bf16.mxu1 %v5240_v52  ;;  %v5330_v51 = vld [vmem:[%s7398_s3 + $0x128] ss:$16 sps:$4 sm:$0xff]   ;;  %v5335_v52 = vld [vmem:[%s7398_s3 + $0x144] ss:$16 sps:$4 sm:$0xff]  }
  0xf2   :  { %1791 = vmatpush1.bf16.msra.mxu0 %v5235_v53  ;;  %1955 = vmatpush1.bf16.msra.mxu1 %v5238_v54  ;;  %v5338_v53 = vld [vmem:[%s7398_s3 + $0x14c] ss:$16 sps:$4 sm:$0xff]   ;;  %v5333_v54 = vld [vmem:[%s7398_s3 + $0x140] ss:$16 sps:$4 sm:$0xff]  }
  0xf3   :  { %1792 = vmatprep.subr.bf16.mxu0 %v5243_v55  ;;  %1956 = vmatprep.subr.bf16.mxu1 %v5246_v56  ;;  %v5336_v55 = vld [vmem:[%s7398_s3 + $0x148] ss:$16 sps:$4 sm:$0xff]   ;;  %v5341_v56 = vld [vmem:[%s7398_s3 + $0x164] ss:$16 sps:$4 sm:$0xff]  }
  0xf6   :  { %1793 = vmatpush1.bf16.msra.mxu0 %v5241_v57  ;;  %1957 = vmatpush1.bf16.msra.mxu1 %v5244_v58  ;;  %v5344_v57 = vld [vmem:[%s7398_s3 + $0x16c] ss:$16 sps:$4 sm:$0xff]   ;;  %v5339_v58 = vld [vmem:[%s7398_s3 + $0x160] ss:$16 sps:$4 sm:$0xff]  }
  0xf7   :  { %1794 = vmatprep.subr.bf16.mxu0 %v5249_v59  ;;  %1958 = vmatprep.subr.bf16.mxu1 %v5252_v60  ;;  %v5342_v59 = vld [vmem:[%s7398_s3 + $0x168] ss:$16 sps:$4 sm:$0xff]   ;;  %v5347_v60 = vld [vmem:[%s7398_s3 + $0x184] ss:$16 sps:$4 sm:$0xff]  }
  0xfa   :  { %1795 = vmatpush1.bf16.msra.mxu0 %v5247_v61  ;;  %1959 = vmatpush1.bf16.msra.mxu1 %v5250_v62  ;;  %v5350_v61 = vld [vmem:[%s7398_s3 + $0x18c] ss:$16 sps:$4 sm:$0xff]   ;;  %v5345_v62 = vld [vmem:[%s7398_s3 + $0x180] ss:$16 sps:$4 sm:$0xff]  }
  0xfb   :  { %1796 = vmatprep.subr.bf16.mxu0 %v5255_v63  ;;  %1960 = vmatprep.subr.bf16.mxu1 %v5258_v0  ;;  %v5348_v63 = vld [vmem:[%s7398_s3 + $0x188] ss:$16 sps:$4 sm:$0xff]   ;;  %v5353_v0 = vld [vmem:[%s7398_s3 + $0x1a4] ss:$16 sps:$4 sm:$0xff]  }
  0xfe   :  { %1797 = vmatpush1.bf16.msra.mxu0 %v5253_v1  ;;  %1961 = vmatpush1.bf16.msra.mxu1 %v5256_v2  ;;  %v5356_v1 = vld [vmem:[%s7398_s3 + $0x1ac] ss:$16 sps:$4 sm:$0xff]   ;;  %v5351_v2 = vld [vmem:[%s7398_s3 + $0x1a0] ss:$16 sps:$4 sm:$0xff]  }
  0xff   :  { %1798 = vmatprep.subr.bf16.mxu0 %v5261_v3  ;;  %1962 = vmatprep.subr.bf16.mxu1 %v5264_v4  ;;  %v5354_v3 = vld [vmem:[%s7398_s3 + $0x1a8] ss:$16 sps:$4 sm:$0xff]   ;;  %v5359_v4 = vld [vmem:[%s7398_s3 + $0x1c4] ss:$16 sps:$4 sm:$0xff]  }
 0x102   :  { %1799 = vmatpush1.bf16.msra.mxu0 %v5259_v5  ;;  %1963 = vmatpush1.bf16.msra.mxu1 %v5262_v6  ;;  %v5362_v5 = vld [vmem:[%s7398_s3 + $0x1cc] ss:$16 sps:$4 sm:$0xff]   ;;  %v5357_v6 = vld [vmem:[%s7398_s3 + $0x1c0] ss:$16 sps:$4 sm:$0xff]  }
 0x103   :  { %1800 = vmatprep.subr.bf16.mxu0 %v5267_v7  ;;  %1964 = vmatprep.subr.bf16.mxu1 %v5270_v8  ;;  %v5360_v7 = vld [vmem:[%s7398_s3 + $0x1c8] ss:$16 sps:$4 sm:$0xff]   ;;  %v5365_v8 = vld [vmem:[%s7398_s3 + $0x1e4] ss:$16 sps:$4 sm:$0xff]  }
 0x106   :  { %1801 = vmatpush1.bf16.msra.mxu0 %v5265_v9  ;;  %1965 = vmatpush1.bf16.msra.mxu1 %v5268_v10  ;;  %v5368_v9 = vld [vmem:[%s7398_s3 + $0x1ec] ss:$16 sps:$4 sm:$0xff]   ;;  %v5363_v10 = vld [vmem:[%s7398_s3 + $0x1e0] ss:$16 sps:$4 sm:$0xff]  }
 0x107   :  { %2797 = vmatprep.subr.bf16.mxu0 %v5275_v12  ;;  %2879 = vmatprep.subr.bf16.mxu1 %v5278_v14  ;;  %v5366_v12 = vld [vmem:[%s7398_s3 + $0x1e8] ss:$16 sps:$4 sm:$0xff]   ;;  %v5371_v14 = vld [vmem:[%s7398_s3 + $0x204] ss:$16 sps:$4 sm:$0xff]  }
 0x109   :  { %1803 = vmatmul.mubr.bf16.vlgmr.msra.gmra.mrb[0].mxu0 %v4219_v11  ;;  %1967 = vmatmul.mubr.bf16.vlgmr.msra.gmra.mrb[0].mxu1 %v4219_v11  ;;  %v5374_v11 = vld [vmem:[%s7398_s3 + $0x20c] ss:$16 sps:$4 sm:$0xff]  }
 0x10a   :  { %2798 = vmatpush1.bf16.msra.mxu0 %v5273_v15  ;;  %2880 = vmatpush1.bf16.msra.mxu1 %v5276_v16  ;;  %v319_v15 = vlaneseq }
 0x10b   :  { %2799 = vmatprep.subr.bf16.mxu0 %v5281_v17  ;;  %2881 = vmatprep.subr.bf16.mxu1 %v5284_v13  ;;  %v6781_v17 = vld [vmem:[%s7400_s2] sm:$0xf] }
 0x10c   :  { %v6776_v16 = vshrl.u32 %v319_v15, 7 }
 0x10e   :  { %2800 = vmatpush1.bf16.msra.mxu0 %v5279_v18  ;;  %2882 = vmatpush1.bf16.msra.mxu1 %v5282_v19  ;;  %v6784_v13 = vsub.s32 0, %v6776_v16  ;;  %v6787_v18 = vsub.s32 1, %v6776_v16  ;;  %v333_v19 = vsub.s32 3, %v6776_v16 }
 0x10f   :  { %2801 = vmatprep.subr.bf16.mxu0 %v5287_v20  ;;  %2883 = vmatprep.subr.bf16.mxu1 %v5290_v21 }
 0x110   :  { %v322_v20 = vrot.slane %v6781_v17, %v6784_v13  ;;  %v326_v21 = vrot.slane %v6781_v17, %v6787_v18 }
 0x112   :  { %2802 = vmatpush1.bf16.msra.mxu0 %v5285_v22  ;;  %2884 = vmatpush1.bf16.msra.mxu1 %v5288_v23  ;;  %v334_v22 = vrot.slane %v6781_v17, %v333_v19 }
 0x113   :  { %2803 = vmatprep.subr.bf16.mxu0 %v5293_v24  ;;  %2885 = vmatprep.subr.bf16.mxu1 %v5296_v25 }
 0x116   :  { %2804 = vmatpush1.bf16.msra.mxu0 %v5291_v26  ;;  %2886 = vmatpush1.bf16.msra.mxu1 %v5294_v27 }
 0x117   :  { %2805 = vmatprep.subr.bf16.mxu0 %v5299_v28  ;;  %2887 = vmatprep.subr.bf16.mxu1 %v5302_v29 }
 0x11a   :  { %2806 = vmatpush1.bf16.msra.mxu0 %v5297_v30  ;;  %2888 = vmatpush1.bf16.msra.mxu1 %v5300_v31 }
 0x11b   :  { %2807 = vmatprep.subr.bf16.mxu0 %v5305_v32  ;;  %2889 = vmatprep.subr.bf16.mxu1 %v5308_v33 }
 0x11e   :  { %2808 = vmatpush1.bf16.msra.mxu0 %v5303_v34  ;;  %2890 = vmatpush1.bf16.msra.mxu1 %v5306_v35 }
 0x11f   :  { %2809 = vmatprep.subr.bf16.mxu0 %v5311_v36  ;;  %2891 = vmatprep.subr.bf16.mxu1 %v5314_v37 }
 0x122   :  { %2810 = vmatpush1.bf16.msra.mxu0 %v5309_v38  ;;  %2892 = vmatpush1.bf16.msra.mxu1 %v5312_v39 }
 0x123   :  { %2811 = vmatprep.subr.bf16.mxu0 %v5317_v40  ;;  %2893 = vmatprep.subr.bf16.mxu1 %v5320_v41 }
 0x126   :  { %2812 = vmatpush1.bf16.msra.mxu0 %v5315_v42  ;;  %2894 = vmatpush1.bf16.msra.mxu1 %v5318_v43 }
 0x127   :  { %2813 = vmatprep.subr.bf16.mxu0 %v5323_v44  ;;  %2895 = vmatprep.subr.bf16.mxu1 %v5326_v45 }
 0x12a   :  { %2814 = vmatpush1.bf16.msra.mxu0 %v5321_v46  ;;  %2896 = vmatpush1.bf16.msra.mxu1 %v5324_v47 }
 0x12b   :  { %2815 = vmatprep.subr.bf16.mxu0 %v5329_v48  ;;  %2897 = vmatprep.subr.bf16.mxu1 %v5332_v49 }
 0x12e   :  { %2816 = vmatpush1.bf16.msra.mxu0 %v5327_v50  ;;  %2898 = vmatpush1.bf16.msra.mxu1 %v5330_v51  ;;  %v5369_v50 = vld [vmem:[%s7398_s3 + $0x200] ss:$16 sps:$4 sm:$0xff]   ;;  %v5372_v51 = vld [vmem:[%s7398_s3 + $0x208] ss:$16 sps:$4 sm:$0xff]  }
 0x12f   :  { %2817 = vmatprep.subr.bf16.mxu0 %v5335_v52  ;;  %2899 = vmatprep.subr.bf16.mxu1 %v5338_v53  ;;  %v5377_v53 = vld [vmem:[%s7398_s3 + $0x224] ss:$16 sps:$4 sm:$0xff]  }
 0x132   :  { %2818 = vmatpush1.bf16.msra.mxu0 %v5333_v54  ;;  %2900 = vmatpush1.bf16.msra.mxu1 %v5336_v55  ;;  %v5380_v54 = vld [vmem:[%s7398_s3 + $0x22c] ss:$16 sps:$4 sm:$0xff]  }
 0x133   :  { %2819 = vmatprep.subr.bf16.mxu0 %v5341_v56  ;;  %2901 = vmatprep.subr.bf16.mxu1 %v5344_v57  ;;  %v5375_v56 = vld [vmem:[%s7398_s3 + $0x220] ss:$16 sps:$4 sm:$0xff]   ;;  %v5378_v57 = vld [vmem:[%s7398_s3 + $0x228] ss:$16 sps:$4 sm:$0xff]  }
 0x136   :  { %2820 = vmatpush1.bf16.msra.mxu0 %v5339_v58  ;;  %2902 = vmatpush1.bf16.msra.mxu1 %v5342_v59  ;;  %v5383_v58 = vld [vmem:[%s7398_s3 + $0x244] ss:$16 sps:$4 sm:$0xff]   ;;  %v5386_v59 = vld [vmem:[%s7398_s3 + $0x24c] ss:$16 sps:$4 sm:$0xff]  }
 0x137   :  { %2821 = vmatprep.subr.bf16.mxu0 %v5347_v60  ;;  %2903 = vmatprep.subr.bf16.mxu1 %v5350_v61  ;;  %v5381_v60 = vld [vmem:[%s7398_s3 + $0x240] ss:$16 sps:$4 sm:$0xff]   ;;  %v5384_v61 = vld [vmem:[%s7398_s3 + $0x248] ss:$16 sps:$4 sm:$0xff]  }
 0x13a   :  { %2822 = vmatpush1.bf16.msra.mxu0 %v5345_v62  ;;  %2904 = vmatpush1.bf16.msra.mxu1 %v5348_v63  ;;  %v5389_v62 = vld [vmem:[%s7398_s3 + $0x264] ss:$16 sps:$4 sm:$0xff]   ;;  %v5392_v63 = vld [vmem:[%s7398_s3 + $0x26c] ss:$16 sps:$4 sm:$0xff]  }
 0x13b   :  { %2823 = vmatprep.subr.bf16.mxu0 %v5353_v0  ;;  %2905 = vmatprep.subr.bf16.mxu1 %v5356_v1  ;;  %v5387_v0 = vld [vmem:[%s7398_s3 + $0x260] ss:$16 sps:$4 sm:$0xff]   ;;  %v5390_v1 = vld [vmem:[%s7398_s3 + $0x268] ss:$16 sps:$4 sm:$0xff]  }
 0x13e   :  { %2824 = vmatpush1.bf16.msra.mxu0 %v5351_v2  ;;  %2906 = vmatpush1.bf16.msra.mxu1 %v5354_v3  ;;  %v5395_v2 = vld [vmem:[%s7398_s3 + $0x284] ss:$16 sps:$4 sm:$0xff]   ;;  %v5398_v3 = vld [vmem:[%s7398_s3 + $0x28c] ss:$16 sps:$4 sm:$0xff]  }
 0x13f   :  { %2825 = vmatprep.subr.bf16.mxu0 %v5359_v4  ;;  %2907 = vmatprep.subr.bf16.mxu1 %v5362_v5  ;;  %v329_v4 = vsub.s32 2, %v6776_v16  ;;  %v5393_v5 = vld [vmem:[%s7398_s3 + $0x280] ss:$16 sps:$4 sm:$0xff]   ;;  %v5536_v16 = vld [vmem:[%s7399_s5 + $0x174] ss:$8 sps:$4 sm:$0xff]  }
 0x142   :  { %2826 = vmatpush1.bf16.msra.mxu0 %v5357_v6  ;;  %2908 = vmatpush1.bf16.msra.mxu1 %v5360_v7  ;;  %v5396_v6 = vld [vmem:[%s7398_s3 + $0x288] ss:$16 sps:$4 sm:$0xff]   ;;  %v5401_v7 = vld [vmem:[%s7398_s3 + $0x2a4] ss:$16 sps:$4 sm:$0xff]  }
 0x143   :  { %2827 = vmatprep.subr.bf16.mxu0 %v5365_v8  ;;  %2909 = vmatprep.subr.bf16.mxu1 %v5368_v9  ;;  %v5404_v8 = vld [vmem:[%s7398_s3 + $0x2ac] ss:$16 sps:$4 sm:$0xff]   ;;  %v330_v9 = vrot.slane %v6781_v17, %v329_v4  ;;  %v5405_v17 = vld [vmem:[%s7398_s3 + $0x2c0] ss:$16 sps:$4 sm:$0xff]  }
 0x146   :  { %2828 = vmatpush1.bf16.msra.mxu0 %v5363_v10  ;;  %2910 = vmatpush1.bf16.msra.mxu1 %v5366_v12  ;;  %v5399_v10 = vld [vmem:[%s7398_s3 + $0x2a0] ss:$16 sps:$4 sm:$0xff]   ;;  %v5402_v12 = vld [vmem:[%s7398_s3 + $0x2a8] ss:$16 sps:$4 sm:$0xff]  }
 0x147   :  { %2838 = vmatprep.subr.bf16.mxu0 %v5371_v14  ;;  %2920 = vmatprep.subr.bf16.mxu1 %v5374_v11  ;;  %v5407_v14 = vld [vmem:[%s7398_s3 + $0x2c4] ss:$16 sps:$4 sm:$0xff]   ;;  %v5410_v11 = vld [vmem:[%s7398_s3 + $0x2cc] ss:$16 sps:$4 sm:$0xff]  }
 0x1dc   :  { %v1804_v23 = vpop.f32.mrb[0].mxu0  ;;  %v6797_v24 = vpop.f32.mrb[0].mxu1 }
 0x1dd   :  { %v4832_v25 = vadd.f32 %v1804_v23, %v322_v20  ;;  %v1806_v26 = vpop.f32.mrb[1].mxu0  ;;  %v1970_v27 = vpop.f32.mrb[1].mxu1  ;;  %v6876_v15 = vadd.f32 %v6797_v24, %v330_v9  ;;  %v5408_v20 = vld [vmem:[%s7398_s3 + $0x2c8] ss:$16 sps:$4 sm:$0xff]   ;;  %v5411_v24 = vld [vmem:[%s7398_s3 + $0x2e0] ss:$16 sps:$4 sm:$0xff]  }
 0x1de   :  { %v4833_v28 = vadd.f32 %v1806_v26, %v326_v21  ;;  %v4835_v29 = vadd.f32 %v1970_v27, %v334_v22  ;;  %v1808_v30 = vpop.f32.mrb[2].mxu0  ;;  %v1972_v31 = vpop.f32.mrb[2].mxu1  ;;  %v5413_v21 = vld [vmem:[%s7398_s3 + $0x2e4] ss:$16 sps:$4 sm:$0xff]   ;;  %v5416_v22 = vld [vmem:[%s7398_s3 + $0x2ec] ss:$16 sps:$4 sm:$0xff]  }
 0x1df   :  { %v4477_v32 = vmul.f32 -1.442695, %v4832_v25  ;;  %v1809_v33 = vpop.f32.mrb[3].mxu0  ;;  %v1973_v34 = vpop.f32.mrb[3].mxu1  ;;  %v4479_v23 = vmul.f32 -1.442695, %v6876_v15 }
 0x1e0   :  { %v4478_v35 = vmul.f32 -1.442695, %v4833_v28  ;;  %v4480_v36 = vmul.f32 -1.442695, %v4835_v29  ;;  %v5419_v26 = vld [vmem:[%s7398_s3 + $0x304] ss:$16 sps:$4 sm:$0xff]  }
 0x1e1   :  { %5627 = vpow2.f32 %v4477_v32  ;;  %v5422_v27 = vld [vmem:[%s7398_s3 + $0x30c] ss:$16 sps:$4 sm:$0xff]   ;;  %v5425_v30 = vld [vmem:[%s7398_s3 + $0x324] ss:$16 sps:$4 sm:$0xff]   ;;  %v5423_v32 = vld [vmem:[%s7398_s3 + $0x320] ss:$16 sps:$4 sm:$0xff]  }
 0x1e2   :  { %5629 = vpow2.f32 %v4478_v35  ;;  %v5428_v31 = vld [vmem:[%s7398_s3 + $0x32c] ss:$16 sps:$4 sm:$0xff]   ;;  %v5426_v33 = vld [vmem:[%s7398_s3 + $0x328] ss:$16 sps:$4 sm:$0xff]   ;;  %v5431_v34 = vld [vmem:[%s7398_s3 + $0x344] ss:$16 sps:$4 sm:$0xff]  }
 0x1e3   :  { %5631 = vpow2.f32 %v4480_v36  ;;  %v5434_v35 = vld [vmem:[%s7398_s3 + $0x34c] ss:$16 sps:$4 sm:$0xff]   ;;  %v5429_v36 = vld [vmem:[%s7398_s3 + $0x340] ss:$16 sps:$4 sm:$0xff]  }
 0x1e4   :  { %v5477_v9 = vld [vmem:[%s7399_s5 + $0x40] ss:$8 sps:$4 sm:$0xff]  }
 0x1eb   :  { %v5628_v37 = vpop.eup %5627 }
 0x1ec   :  { %v1987_v38 = vadd.f32 1.0, %v5628_v37  ;;  %v5630_v39 = vpop.eup %5629  ;;  %v5432_v37 = vld [vmem:[%s7398_s3 + $0x348] ss:$16 sps:$4 sm:$0xff]  }
 0x1ed   :  { %v5632_v40 = vpop.eup %5631  ;;  %v1988_v41 = vadd.f32 1.0, %v5630_v39  ;;  %v5437_v39 = vld [vmem:[%s7398_s3 + $0x364] ss:$16 sps:$4 sm:$0xff]  }
 0x1ee   :  { %5633 = vrcp.f32 %v1987_v38  ;;  %v1990_v42 = vadd.f32 1.0, %v5632_v40  ;;  %v5440_v40 = vld [vmem:[%s7398_s3 + $0x36c] ss:$16 sps:$4 sm:$0xff]  }
 0x1ef   :  { %5635 = vrcp.f32 %v1988_v41 }
 0x1f0   :  { %5637 = vrcp.f32 %v1990_v42  ;;  %v5435_v42 = vld [vmem:[%s7398_s3 + $0x360] ss:$16 sps:$4 sm:$0xff]  }
 0x1f1   :  { %5639 = vpow2.f32 %v4479_v23  ;;  %v5492_v23 = vld [vmem:[%s7399_s5 + $0x90] ss:$8 sps:$4 sm:$0xff]  }
 0x1f8   :  { %v5634_v43 = vpop.eup %5633 }
 0x1f9   :  { %v5636_v44 = vpop.eup %5635  ;;  %v1999_v45 = vmul.f32 %v5634_v43, %v4832_v25  ;;  %v5414_v25 = vld [vmem:[%s7398_s3 + $0x2e8] ss:$16 sps:$4 sm:$0xff]  }
 0x1fa   :  { %v5638_v46 = vpop.eup %5637  ;;  %v2000_v47 = vmul.f32 %v5636_v44, %v4833_v28  ;;  %v5417_v28 = vld [vmem:[%s7398_s3 + $0x300] ss:$16 sps:$4 sm:$0xff]   ;;  %v5438_v43 = vld [vmem:[%s7398_s3 + $0x368] ss:$16 sps:$4 sm:$0xff]   ;;  %v5443_v44 = vld [vmem:[%s7398_s3 + $0x384] ss:$16 sps:$4 sm:$0xff]  }
 0x1fb   :  { %v2002_v48 = vmul.f32 %v5638_v46, %v4835_v29  ;;  %v2003_v52 = vpack.c.bf16 %v1999_v45, %v1999_v45  ;;  %v5420_v29 = vld [vmem:[%s7398_s3 + $0x308] ss:$16 sps:$4 sm:$0xff]   ;;  %v5640_v38 = vpop.eup %5639  ;;  %v5446_v45 = vld [vmem:[%s7398_s3 + $0x38c] ss:$16 sps:$4 sm:$0xff]   ;;  %v5441_v46 = vld [vmem:[%s7398_s3 + $0x380] ss:$16 sps:$4 sm:$0xff]  }
 0x1fc   :  { %v2004_v49 = vpack.c.bf16 %v2000_v47, %v2000_v47  ;;  %v1989_v41 = vadd.f32 1.0, %v5640_v38  ;;  %v5444_v47 = vld [vmem:[%s7398_s3 + $0x388] ss:$16 sps:$4 sm:$0xff]  }
 0x1fd   :  { %v2006_v55 = vpack.c.bf16 %v2002_v48, %v2002_v48  ;;  %v5449_v48 = vld [vmem:[%s7398_s3 + $0x3a4] ss:$16 sps:$4 sm:$0xff]  }
 0x1fe   :  { %2829 = vmatprep.mubr.bf16.mxu0 %v2004_v49  ;;  %2911 = vmatprep.mubr.bf16.mxu1 %v2004_v49  ;;  %5641 = vrcp.f32 %v1989_v41  ;;  %v5452_v49 = vld [vmem:[%s7398_s3 + $0x3ac] ss:$16 sps:$4 sm:$0xff]  }
 0x1ff   :  { %2830 = vmatmul.mubr.bf16.vlgmr.msra.gmra.mrb[4].mxu0 %v2003_v52  ;;  %2912 = vmatmul.mubr.bf16.vlgmr.msra.gmra.mrb[4].mxu1 %v2003_v52  ;;  %v5455_v52 = vld [vmem:[%s7398_s3 + $0x3c4] ss:$16 sps:$4 sm:$0xff]  }
 0x200   :  { %2839 = vmatpush1.bf16.msra.mxu0 %v5369_v50  ;;  %2921 = vmatpush1.bf16.msra.mxu1 %v5372_v51  ;;  %v5447_v50 = vld [vmem:[%s7398_s3 + $0x3a0] ss:$16 sps:$4 sm:$0xff]   ;;  %v5450_v51 = vld [vmem:[%s7398_s3 + $0x3a8] ss:$16 sps:$4 sm:$0xff]  }
 0x201   :  { %2870 = vmatprep.mubr.bf16.mxu0 %v2006_v55  ;;  %2952 = vmatprep.mubr.bf16.mxu1 %v2006_v55  ;;  %v5456_v55 = vld [vmem:[%s7398_s3 + $0x3c8] ss:$16 sps:$4 sm:$0xff]  }
 0x202   :  { %2840 = vmatprep.subr.bf16.mxu0 %v5377_v53  ;;  %2922 = vmatprep.subr.bf16.mxu1 %v5380_v54  ;;  %v5458_v53 = vld [vmem:[%s7398_s3 + $0x3cc] ss:$16 sps:$4 sm:$0xff]   ;;  %v5453_v54 = vld [vmem:[%s7398_s3 + $0x3c0] ss:$16 sps:$4 sm:$0xff]  }
 0x204   :  { %2841 = vmatpush1.bf16.msra.mxu0 %v5375_v56  ;;  %2923 = vmatpush1.bf16.msra.mxu1 %v5378_v57  ;;  %v5461_v56 = vld [vmem:[%s7398_s3 + $0x3e4] ss:$16 sps:$4 sm:$0xff]   ;;  %v5464_v57 = vld [vmem:[%s7398_s3 + $0x3ec] ss:$16 sps:$4 sm:$0xff]  }
 0x205   :  { %2842 = vmatprep.subr.bf16.mxu0 %v5383_v58  ;;  %2924 = vmatprep.subr.bf16.mxu1 %v5386_v59  ;;  %v5459_v59 = vld [vmem:[%s7398_s3 + $0x3e0] ss:$16 sps:$4 sm:$0xff]  }
 0x208   :  { %2843 = vmatpush1.bf16.msra.mxu0 %v5381_v60  ;;  %2925 = vmatpush1.bf16.msra.mxu1 %v5384_v61  ;;  %v5642_v58 = vpop.eup %5641  ;;  %v5462_v60 = vld [vmem:[%s7398_s3 + $0x3e8] ss:$16 sps:$4 sm:$0xff]  }
 0x209   :  { %2844 = vmatprep.subr.bf16.mxu0 %v5389_v62  ;;  %2926 = vmatprep.subr.bf16.mxu1 %v5392_v63  ;;  %v2001_v61 = vmul.f32 %v5642_v58, %v6876_v15  ;;  %v5467_v62 = vld [vmem:[%s7399_s5 + $0x4] ss:$8 sps:$4 sm:$0xff]   ;;  %v5465_v63 = vld [vmem:[%s7399_s5] ss:$8 sps:$4 sm:$0xff]   ;;  %v5488_v15 = vld [vmem:[%s7399_s5 + $0x74] ss:$8 sps:$4 sm:$0xff]  }
 0x20c   :  { %2845 = vmatpush1.bf16.msra.mxu0 %v5387_v0  ;;  %2927 = vmatpush1.bf16.msra.mxu1 %v5390_v1  ;;  %v2005_v0 = vpack.c.bf16 %v2001_v61, %v2001_v61  ;;  %v5470_v1 = vld [vmem:[%s7399_s5 + $0x14] ss:$8 sps:$4 sm:$0xff]  }
 0x20d   :  { %2846 = vmatprep.subr.bf16.mxu0 %v5395_v2  ;;  %2928 = vmatprep.subr.bf16.mxu1 %v5398_v3  ;;  %v5468_v2 = vld [vmem:[%s7399_s5 + $0x10] ss:$8 sps:$4 sm:$0xff]   ;;  %v5473_v3 = vld [vmem:[%s7399_s5 + $0x24] ss:$8 sps:$4 sm:$0xff]  }
 0x210   :  { %2847 = vmatpush1.bf16.msra.mxu0 %v5393_v5  ;;  %2929 = vmatpush1.bf16.msra.mxu1 %v5396_v6  ;;  %v5471_v5 = vld [vmem:[%s7399_s5 + $0x20] ss:$8 sps:$4 sm:$0xff]   ;;  %v5476_v6 = vld [vmem:[%s7399_s5 + $0x34] ss:$8 sps:$4 sm:$0xff]  }
 0x211   :  { %2848 = vmatprep.subr.bf16.mxu0 %v5401_v7  ;;  %2930 = vmatprep.subr.bf16.mxu1 %v5404_v8  ;;  %v5474_v7 = vld [vmem:[%s7399_s5 + $0x30] ss:$8 sps:$4 sm:$0xff]   ;;  %v5479_v8 = vld [vmem:[%s7399_s5 + $0x44] ss:$8 sps:$4 sm:$0xff]  }
 0x214   :  { %2849 = vmatpush1.bf16.msra.mxu0 %v5399_v10  ;;  %2931 = vmatpush1.bf16.msra.mxu1 %v5402_v12  ;;  %v5482_v10 = vld [vmem:[%s7399_s5 + $0x54] ss:$8 sps:$4 sm:$0xff]   ;;  %v5480_v12 = vld [vmem:[%s7399_s5 + $0x50] ss:$8 sps:$4 sm:$0xff]  }
 0x215   :  { %2850 = vmatprep.subr.bf16.mxu0 %v5407_v14  ;;  %2932 = vmatprep.subr.bf16.mxu1 %v5410_v11  ;;  %v5485_v14 = vld [vmem:[%s7399_s5 + $0x64] ss:$8 sps:$4 sm:$0xff]   ;;  %v5483_v11 = vld [vmem:[%s7399_s5 + $0x60] ss:$8 sps:$4 sm:$0xff]  }
 0x218   :  { %2851 = vmatpush1.bf16.msra.mxu0 %v5405_v17  ;;  %2933 = vmatpush1.bf16.msra.mxu1 %v5408_v20  ;;  %v5486_v17 = vld [vmem:[%s7399_s5 + $0x70] ss:$8 sps:$4 sm:$0xff]   ;;  %v5491_v20 = vld [vmem:[%s7399_s5 + $0x84] ss:$8 sps:$4 sm:$0xff]  }
 0x219   :  { %2852 = vmatprep.subr.bf16.mxu0 %v5413_v21  ;;  %2934 = vmatprep.subr.bf16.mxu1 %v5416_v22  ;;  %v5489_v21 = vld [vmem:[%s7399_s5 + $0x80] ss:$8 sps:$4 sm:$0xff]   ;;  %v5494_v22 = vld [vmem:[%s7399_s5 + $0x94] ss:$8 sps:$4 sm:$0xff]  }
 0x21c   :  { %2853 = vmatpush1.bf16.msra.mxu0 %v5411_v24  ;;  %2935 = vmatpush1.bf16.msra.mxu1 %v5414_v25  ;;  %v5497_v24 = vld [vmem:[%s7399_s5 + $0xa4] ss:$8 sps:$4 sm:$0xff]   ;;  %v5495_v25 = vld [vmem:[%s7399_s5 + $0xa0] ss:$8 sps:$4 sm:$0xff]  }
 0x21d   :  { %2854 = vmatprep.subr.bf16.mxu0 %v5419_v26  ;;  %2936 = vmatprep.subr.bf16.mxu1 %v5422_v27  ;;  %v5500_v26 = vld [vmem:[%s7399_s5 + $0xb4] ss:$8 sps:$4 sm:$0xff]   ;;  %v5498_v27 = vld [vmem:[%s7399_s5 + $0xb0] ss:$8 sps:$4 sm:$0xff]  }
 0x220   :  { %2855 = vmatpush1.bf16.msra.mxu0 %v5417_v28  ;;  %2937 = vmatpush1.bf16.msra.mxu1 %v5420_v29  ;;  %v5503_v28 = vld [vmem:[%s7399_s5 + $0xc4] ss:$8 sps:$4 sm:$0xff]   ;;  %v5501_v29 = vld [vmem:[%s7399_s5 + $0xc0] ss:$8 sps:$4 sm:$0xff]  }
 0x221   :  { %2856 = vmatprep.subr.bf16.mxu0 %v5425_v30  ;;  %2938 = vmatprep.subr.bf16.mxu1 %v5428_v31  ;;  %v5506_v30 = vld [vmem:[%s7399_s5 + $0xd4] ss:$8 sps:$4 sm:$0xff]   ;;  %v5504_v31 = vld [vmem:[%s7399_s5 + $0xd0] ss:$8 sps:$4 sm:$0xff]  }
 0x224   :  { %2857 = vmatpush1.bf16.msra.mxu0 %v5423_v32  ;;  %2939 = vmatpush1.bf16.msra.mxu1 %v5426_v33  ;;  %v5509_v32 = vld [vmem:[%s7399_s5 + $0xe4] ss:$8 sps:$4 sm:$0xff]   ;;  %v5507_v33 = vld [vmem:[%s7399_s5 + $0xe0] ss:$8 sps:$4 sm:$0xff]  }
 0x225   :  { %2858 = vmatprep.subr.bf16.mxu0 %v5431_v34  ;;  %2940 = vmatprep.subr.bf16.mxu1 %v5434_v35  ;;  %v5512_v34 = vld [vmem:[%s7399_s5 + $0xf4] ss:$8 sps:$4 sm:$0xff]   ;;  %v5510_v35 = vld [vmem:[%s7399_s5 + $0xf0] ss:$8 sps:$4 sm:$0xff]  }
 0x228   :  { %2859 = vmatpush1.bf16.msra.mxu0 %v5429_v36  ;;  %2941 = vmatpush1.bf16.msra.mxu1 %v5432_v37  ;;  %v5515_v36 = vld [vmem:[%s7399_s5 + $0x104] ss:$8 sps:$4 sm:$0xff]   ;;  %v2135_v37 = vld [vmem:[%s7401_s4] sm:$0xf] }
 0x229   :  { %2860 = vmatprep.subr.bf16.mxu0 %v5437_v39  ;;  %2942 = vmatprep.subr.bf16.mxu1 %v5440_v40  ;;  %v2140_v38 = vrot.slane %v2135_v37, %v6784_v13  ;;  %v2144_v39 = vrot.slane %v2135_v37, %v6787_v18  ;;  %v2152_v40 = vrot.slane %v2135_v37, %v333_v19 }
 0x22c   :  { %2861 = vmatpush1.bf16.msra.mxu0 %v5435_v42  ;;  %2943 = vmatpush1.bf16.msra.mxu1 %v5438_v43 }
 0x22d   :  { %2862 = vmatprep.subr.bf16.mxu0 %v5443_v44  ;;  %2944 = vmatprep.subr.bf16.mxu1 %v5446_v45 }
 0x230   :  { %2863 = vmatpush1.bf16.msra.mxu0 %v5441_v46  ;;  %2945 = vmatpush1.bf16.msra.mxu1 %v5444_v47 }
 0x231   :  { %2864 = vmatprep.subr.bf16.mxu0 %v5449_v48  ;;  %2946 = vmatprep.subr.bf16.mxu1 %v5452_v49 }
 0x234   :  { %2865 = vmatpush1.bf16.msra.mxu0 %v5447_v50  ;;  %2947 = vmatpush1.bf16.msra.mxu1 %v5450_v51 }
 0x235   :  { %2866 = vmatprep.subr.bf16.mxu0 %v5455_v52  ;;  %2948 = vmatprep.subr.bf16.mxu1 %v5458_v53 }
 0x238   :  { %2867 = vmatpush1.bf16.msra.mxu0 %v5453_v54  ;;  %2949 = vmatpush1.bf16.msra.mxu1 %v5456_v55 }
 0x239   :  { %2868 = vmatprep.subr.bf16.mxu0 %v5461_v56  ;;  %2950 = vmatprep.subr.bf16.mxu1 %v5464_v57 }
 0x23c   :  { %2869 = vmatpush1.bf16.msra.mxu0 %v5459_v59  ;;  %2951 = vmatpush1.bf16.msra.mxu1 %v5462_v60 }
 0x23d   :  { %3389 = vmatprep.subr.bf16.mxu0 %v5467_v62 }
 0x23f   :  { %2871 = vmatmul.mubr.bf16.vlgmr.msra.gmra.mrb[4].mxu0 %v2005_v0  ;;  %2953 = vmatmul.mubr.bf16.vlgmr.msra.gmra.mrb[4].mxu1 %v2005_v0 }
 0x240   :  { %3390 = vmatpush1.bf16.msra.mxu0 %v5465_v63 }
 0x241   :  { %3391 = vmatprep.subr.bf16.mxu0 %v5470_v1 }
 0x244   :  { %3392 = vmatpush1.bf16.msra.mxu0 %v5468_v2 }
 0x245   :  { %3393 = vmatprep.subr.bf16.mxu0 %v5473_v3  ;;  %v5513_v3 = vld [vmem:[%s7399_s5 + $0x100] ss:$8 sps:$4 sm:$0xff]  }
 0x248   :  { %3394 = vmatpush1.bf16.msra.mxu0 %v5471_v5 }
 0x249   :  { %3395 = vmatprep.subr.bf16.mxu0 %v5476_v6  ;;  %v5518_v6 = vld [vmem:[%s7399_s5 + $0x114] ss:$8 sps:$4 sm:$0xff]  }
 0x24c   :  { %3396 = vmatpush1.bf16.msra.mxu0 %v5474_v7 }
 0x24d   :  { %3397 = vmatprep.subr.bf16.mxu0 %v5479_v8  ;;  %v5516_v8 = vld [vmem:[%s7399_s5 + $0x110] ss:$8 sps:$4 sm:$0xff]  }
 0x250   :  { %3398 = vmatpush1.bf16.msra.mxu0 %v5477_v9  ;;  %v5521_v9 = vld [vmem:[%s7399_s5 + $0x124] ss:$8 sps:$4 sm:$0xff]  }
 0x251   :  { %3399 = vmatprep.subr.bf16.mxu0 %v5482_v10  ;;  %v5519_v10 = vld [vmem:[%s7399_s5 + $0x120] ss:$8 sps:$4 sm:$0xff]  }
 0x254   :  { %3400 = vmatpush1.bf16.msra.mxu0 %v5480_v12  ;;  %v5524_v12 = vld [vmem:[%s7399_s5 + $0x134] ss:$8 sps:$4 sm:$0xff]  }
 0x255   :  { %3401 = vmatprep.subr.bf16.mxu0 %v5485_v14  ;;  %v5522_v14 = vld [vmem:[%s7399_s5 + $0x130] ss:$8 sps:$4 sm:$0xff]  }
 0x258   :  { %3402 = vmatpush1.bf16.msra.mxu0 %v5483_v11  ;;  %v5527_v11 = vld [vmem:[%s7399_s5 + $0x144] ss:$8 sps:$4 sm:$0xff]  }
 0x259   :  { %3403 = vmatprep.subr.bf16.mxu0 %v5488_v15  ;;  %v5525_v15 = vld [vmem:[%s7399_s5 + $0x140] ss:$8 sps:$4 sm:$0xff]  }
 0x25c   :  { %3404 = vmatpush1.bf16.msra.mxu0 %v5486_v17  ;;  %v5530_v17 = vld [vmem:[%s7399_s5 + $0x154] ss:$8 sps:$4 sm:$0xff]  }
 0x25d   :  { %3405 = vmatprep.subr.bf16.mxu0 %v5491_v20  ;;  %v2148_v20 = vrot.slane %v2135_v37, %v329_v4  ;;  %v5549_v37 = vld [vmem:[%s7399_s5 + $0x1c0] ss:$8 sps:$4 sm:$0xff]  }
 0x260   :  { %3406 = vmatpush1.bf16.msra.mxu0 %v5489_v21  ;;  %v5528_v21 = vld [vmem:[%s7399_s5 + $0x150] ss:$8 sps:$4 sm:$0xff]  }
 0x261   :  { %3407 = vmatprep.subr.bf16.mxu0 %v5494_v22  ;;  %v5533_v22 = vld [vmem:[%s7399_s5 + $0x164] ss:$8 sps:$4 sm:$0xff]  }
 0x264   :  { %3408 = vmatpush1.bf16.msra.mxu0 %v5492_v23 }
 0x265   :  { %3409 = vmatprep.subr.bf16.mxu0 %v5497_v24  ;;  %v5531_v24 = vld [vmem:[%s7399_s5 + $0x160] ss:$8 sps:$4 sm:$0xff]  }
 0x268   :  { %3410 = vmatpush1.bf16.msra.mxu0 %v5495_v25  ;;  %v5534_v25 = vld [vmem:[%s7399_s5 + $0x170] ss:$8 sps:$4 sm:$0xff]  }
 0x269   :  { %3411 = vmatprep.subr.bf16.mxu0 %v5500_v26  ;;  %v5539_v26 = vld [vmem:[%s7399_s5 + $0x184] ss:$8 sps:$4 sm:$0xff]  }
 0x26c   :  { %3412 = vmatpush1.bf16.msra.mxu0 %v5498_v27  ;;  %v5537_v27 = vld [vmem:[%s7399_s5 + $0x180] ss:$8 sps:$4 sm:$0xff]  }
 0x26d   :  { %3413 = vmatprep.subr.bf16.mxu0 %v5503_v28  ;;  %v5542_v28 = vld [vmem:[%s7399_s5 + $0x194] ss:$8 sps:$4 sm:$0xff]  }
 0x270   :  { %3414 = vmatpush1.bf16.msra.mxu0 %v5501_v29  ;;  %v5540_v29 = vld [vmem:[%s7399_s5 + $0x190] ss:$8 sps:$4 sm:$0xff]  }
 0x271   :  { %3415 = vmatprep.subr.bf16.mxu0 %v5506_v30  ;;  %v5545_v30 = vld [vmem:[%s7399_s5 + $0x1a4] ss:$8 sps:$4 sm:$0xff]  }
 0x274   :  { %3416 = vmatpush1.bf16.msra.mxu0 %v5504_v31  ;;  %v5543_v31 = vld [vmem:[%s7399_s5 + $0x1a0] ss:$8 sps:$4 sm:$0xff]  }
 0x275   :  { %3417 = vmatprep.subr.bf16.mxu0 %v5509_v32 }
 0x278   :  { %3418 = vmatpush1.bf16.msra.mxu0 %v5507_v33  ;;  %v5548_v33 = vld [vmem:[%s7399_s5 + $0x1b4] ss:$8 sps:$4 sm:$0xff]  }
 0x279   :  { %3419 = vmatprep.subr.bf16.mxu0 %v5512_v34 }
 0x27c   :  { %3420 = vmatpush1.bf16.msra.mxu0 %v5510_v35  ;;  %v5546_v35 = vld [vmem:[%s7399_s5 + $0x1b0] ss:$8 sps:$4 sm:$0xff]  }
 0x27d   :  { %3430 = vmatprep.subr.bf16.mxu0 %v5515_v36  ;;  %v5551_v36 = vld [vmem:[%s7399_s5 + $0x1c4] ss:$8 sps:$4 sm:$0xff]  }
 0x312   :  { %v2872_v41 = vpop.f32.mrb[4].mxu0  ;;  %v2954_v42 = vpop.f32.mrb[4].mxu1 }
 0x313   :  { %v4836_v43 = vadd.f32 %v2872_v41, %v2140_v38  ;;  %v2874_v44 = vpop.f32.mrb[5].mxu0  ;;  %v2956_v45 = vpop.f32.mrb[5].mxu1  ;;  %v4838_v23 = vadd.f32 %v2954_v42, %v2148_v20  ;;  %v5554_v38 = vld [vmem:[%s7399_s5 + $0x1d4] ss:$8 sps:$4 sm:$0xff]   ;;  %v5555_v41 = vld [vmem:[%s7399_s5 + $0x1e0] ss:$8 sps:$4 sm:$0xff]  }
 0x314   :  { %v4837_v46 = vadd.f32 %v2874_v44, %v2144_v39  ;;  %v4839_v47 = vadd.f32 %v2956_v45, %v2152_v40  ;;  %v2876_v48 = vpop.f32.mrb[6].mxu0  ;;  %v2958_v49 = vpop.f32.mrb[6].mxu1  ;;  %v5552_v39 = vld [vmem:[%s7399_s5 + $0x1d0] ss:$8 sps:$4 sm:$0xff]   ;;  %v5557_v40 = vld [vmem:[%s7399_s5 + $0x1e4] ss:$8 sps:$4 sm:$0xff]  }
 0x315   :  { %v4609_v50 = vmul.f32 -1.442695, %v4836_v43  ;;  %v2877_v51 = vpop.f32.mrb[7].mxu0  ;;  %v2959_v52 = vpop.f32.mrb[7].mxu1  ;;  %v4611_v4 = vmul.f32 -1.442695, %v4838_v23 }
 0x316   :  { %v4610_v53 = vmul.f32 -1.442695, %v4837_v46  ;;  %v4612_v54 = vmul.f32 -1.442695, %v4839_v47  ;;  %v5560_v42 = vld [vmem:[%s7399_s5 + $0x1f4] ss:$8 sps:$4 sm:$0xff]  }
 0x317   :  { %5643 = vpow2.f32 %v4609_v50  ;;  %v5558_v44 = vld [vmem:[%s7399_s5 + $0x1f0] ss:$8 sps:$4 sm:$0xff]   ;;  %v5562_v48 = vld [vmem:[%s7402_s7] sm:$0xff]   ;;  %v5563_v49 = vld [vmem:[%s7402_s7 + $0x48] sm:$0xff]  }
 0x318   :  { %5645 = vpow2.f32 %v4610_v53  ;;  %v5564_v50 = vld [vmem:[%s7402_s7 + $0x8] sm:$0xff]   ;;  %v5565_v51 = vld [vmem:[%s7402_s7 + $0x50] sm:$0xff]   ;;  %v5567_v53 = vld [vmem:[%s7402_s7 + $0x58] sm:$0xff]  }
 0x319   :  { %5647 = vpow2.f32 %v4612_v54  ;;  %v5566_v52 = vld [vmem:[%s7402_s7 + $0x10] sm:$0xff]   ;;  %v5568_v54 = vld [vmem:[%s7402_s7 + $0x18] sm:$0xff]  }
 0x321   :  { %v5644_v55 = vpop.eup %5643 }
 0x322   :  { %v2973_v56 = vadd.f32 1.0, %v5644_v55  ;;  %v5646_v19 = vpop.eup %5645  ;;  %v5569_v55 = vld [vmem:[%s7402_s7 + $0x60] sm:$0xff]  }
 0x323   :  { %v5648_v57 = vpop.eup %5647  ;;  %v2974_v58 = vadd.f32 1.0, %v5646_v19  ;;  %v5571_v19 = vld [vmem:[%s7402_s7 + $0x68] sm:$0xff]  }
 0x324   :  { %5649 = vrcp.f32 %v2973_v56  ;;  %v2976_v59 = vadd.f32 1.0, %v5648_v57  ;;  %v5570_v56 = vld [vmem:[%s7402_s7 + $0x20] sm:$0xff]   ;;  %v5572_v57 = vld [vmem:[%s7402_s7 + $0x28] sm:$0xff]  }
 0x325   :  { %5651 = vrcp.f32 %v2974_v58  ;;  %v5573_v58 = vld [vmem:[%s7402_s7 + $0x70] sm:$0xff]  }
 0x326   :  { %5653 = vrcp.f32 %v2976_v59  ;;  %v5574_v59 = vld [vmem:[%s7402_s7 + $0x30] sm:$0xff]  }
 0x327   :  { %5655 = vpow2.f32 %v4611_v4  ;;  %v5578_v4 = vld [vmem:[%s7404_s9 + $0x8] sm:$0xff]  }
 0x32e   :  { %v5650_v60 = vpop.eup %5649 }
 0x32f   :  { %v5652_v61 = vpop.eup %5651  ;;  %v2985_v62 = vmul.f32 %v5650_v60, %v4836_v43  ;;  %v5575_v60 = vld [vmem:[%s7402_s7 + $0x78] sm:$0xff]  }
 0x330   :  { %v5654_v63 = vpop.eup %5653  ;;  %v2986_v0 = vmul.f32 %v5652_v61, %v4837_v46  ;;  %v5576_v61 = vld [vmem:[%s7402_s7 + $0x38] sm:$0xff]  }
 0x331   :  { %v2988_v1 = vmul.f32 %v5654_v63, %v4839_v47  ;;  %v2989_v5 = vpack.c.bf16 %v2985_v62, %v2985_v62  ;;  %v5656_v32 = vpop.eup %5655  ;;  %v5561_v47 = vld [vmem:[%s7402_s7 + $0x40] sm:$0xff]  }
 0x332   :  { %v2990_v2 = vpack.c.bf16 %v2986_v0, %v2986_v0  ;;  %v2975_v34 = vadd.f32 1.0, %v5656_v32  ;;  %4748 = vmatprep.subr.bf16.mxu1 %v5561_v47  ;;  %v3057_v62 = vld [vmem:[%s7403_s6] sm:$0x3] }
 0x333   :  { %v2992_v7 = vpack.c.bf16 %v2988_v1, %v2988_v1  ;;  %4749 = vmatpush3.bf16.msra.mxu1 %v5562_v48  ;;  %v3062_v63 = vrot.slane %v3057_v62, %v6784_v13  ;;  %v3066_v0 = vrot.slane %v3057_v62, %v6787_v18  ;;  %v5593_v62 = vld [vmem:[%s7408_s13 + $0x20] ss:$8 sps:$4 sm:$0xff]  }
 0x334   :  { %3421 = vmatprep.mubr.bf16.mxu0 %v2990_v2  ;;  %5657 = vrcp.f32 %v2975_v34  ;;  %4750 = vmatprep.subr.bf16.mxu1 %v5563_v49 }
 0x335   :  { %3422 = vmatmul.mubr.bf16.vlgmr.msra.gmra.mrb[8].mxu0 %v2989_v5 }
 0x336   :  { %3431 = vmatpush1.bf16.msra.mxu0 %v5513_v3  ;;  %3462 = vmatprep.mubr.bf16.mxu0 %v2992_v7 }
 0x337   :  { %3432 = vmatprep.subr.bf16.mxu0 %v5518_v6  ;;  %4751 = vmatpush3.bf16.msra.mxu1 %v5564_v50 }
 0x338   :  { %4752 = vmatprep.subr.bf16.mxu1 %v5565_v51 }
 0x33a   :  { %3433 = vmatpush1.bf16.msra.mxu0 %v5516_v8 }
 0x33b   :  { %3434 = vmatprep.subr.bf16.mxu0 %v5521_v9  ;;  %4753 = vmatpush3.bf16.msra.mxu1 %v5566_v52 }
 0x33c   :  { %4754 = vmatprep.subr.bf16.mxu1 %v5567_v53 }
 0x33e   :  { %3435 = vmatpush1.bf16.msra.mxu0 %v5519_v10  ;;  %v5658_v43 = vpop.eup %5657 }
 0x33f   :  { %3436 = vmatprep.subr.bf16.mxu0 %v5524_v12  ;;  %v2987_v45 = vmul.f32 %v5658_v43, %v4838_v23  ;;  %4755 = vmatpush3.bf16.msra.mxu1 %v5568_v54  ;;  %v5584_v43 = vld [vmem:[%s7406_s11 + $0x18] sm:$0xff]  }
 0x340   :  { %4756 = vmatprep.subr.bf16.mxu1 %v5569_v55 }
 0x341   :  { %v2991_v46 = vpack.c.bf16 %v2987_v45, %v2987_v45  ;;  %v5586_v45 = vld [vmem:[%s7406_s11 + $0x28] sm:$0xff]  }
 0x342   :  { %3437 = vmatpush1.bf16.msra.mxu0 %v5522_v14 }
 0x343   :  { %3438 = vmatprep.subr.bf16.mxu0 %v5527_v11  ;;  %4757 = vmatpush3.bf16.msra.mxu1 %v5570_v56 }
 0x344   :  { %4758 = vmatprep.subr.bf16.mxu1 %v5571_v19 }
 0x346   :  { %3439 = vmatpush1.bf16.msra.mxu0 %v5525_v15 }
 0x347   :  { %3440 = vmatprep.subr.bf16.mxu0 %v5530_v17  ;;  %4759 = vmatpush3.bf16.msra.mxu1 %v5572_v57  ;;  %v5589_v57 = vld [vmem:[%s7408_s13 + $0x4] ss:$8 sps:$4 sm:$0xff]  }
 0x348   :  { %4760 = vmatprep.subr.bf16.mxu1 %v5573_v58  ;;  %v5587_v58 = vld [vmem:[%s7408_s13] ss:$8 sps:$4 sm:$0xff]  }
 0x34a   :  { %3441 = vmatpush1.bf16.msra.mxu0 %v5528_v21 }
 0x34b   :  { %3442 = vmatprep.subr.bf16.mxu0 %v5533_v22  ;;  %4761 = vmatpush3.bf16.msra.mxu1 %v5574_v59  ;;  %v5592_v59 = vld [vmem:[%s7408_s13 + $0x14] ss:$8 sps:$4 sm:$0xff]  }
 0x34c   :  { %4762 = vmatprep.subr.bf16.mxu1 %v5575_v60  ;;  %v5590_v60 = vld [vmem:[%s7408_s13 + $0x10] ss:$8 sps:$4 sm:$0xff]  }
 0x34e   :  { %3443 = vmatpush1.bf16.msra.mxu0 %v5531_v24  ;;  %v5577_v24 = vld [vmem:[%s7404_s9] sm:$0xff]  }
 0x34f   :  { %3444 = vmatprep.subr.bf16.mxu0 %v5536_v16  ;;  %4763 = vmatpush3.bf16.msra.mxu1 %v5576_v61  ;;  %v5687_v16 = vmov 0.0   ;;  %v5595_v61 = vld [vmem:[%s7408_s13 + $0x24] ss:$8 sps:$4 sm:$0xff]  }
 0x350   :  { %4804 = vmatprep.subr.bf16.mxu1 %v5687_v16 }
 0x352   :  { %3445 = vmatpush1.bf16.msra.mxu0 %v5534_v25  ;;  %v5579_v25 = vld [vmem:[%s7404_s9 + $0x10] sm:$0xff]  }
 0x353   :  { %3446 = vmatprep.subr.bf16.mxu0 %v5539_v26  ;;  %v5580_v26 = vld [vmem:[%s7404_s9 + $0x18] sm:$0xff]  }
 0x356   :  { %3447 = vmatpush1.bf16.msra.mxu0 %v5537_v27 }
 0x357   :  { %3448 = vmatprep.subr.bf16.mxu0 %v5542_v28  ;;  %v4679_v28 = vld [vmem:[%s7405_s8] ss:$0 sm:$0xff] }
 0x35a   :  { %3449 = vmatpush1.bf16.msra.mxu0 %v5540_v29 }
 0x35b   :  { %3450 = vmatprep.subr.bf16.mxu0 %v5545_v30 }
 0x35e   :  { %3451 = vmatpush1.bf16.msra.mxu0 %v5543_v31 }
 0x35f   :  { %3452 = vmatprep.subr.bf16.mxu0 %v5548_v33 }
 0x362   :  { %3453 = vmatpush1.bf16.msra.mxu0 %v5546_v35 }
 0x363   :  { %3454 = vmatprep.subr.bf16.mxu0 %v5551_v36 }
 0x366   :  { %3455 = vmatpush1.bf16.msra.mxu0 %v5549_v37 }
 0x367   :  { %3456 = vmatprep.subr.bf16.mxu0 %v5554_v38 }
 0x36a   :  { %3457 = vmatpush1.bf16.msra.mxu0 %v5552_v39 }
 0x36b   :  { %3458 = vmatprep.subr.bf16.mxu0 %v5557_v40  ;;  %v5581_v40 = vld [vmem:[%s7406_s11] sm:$0xff]  }
 0x36e   :  { %3459 = vmatpush1.bf16.msra.mxu0 %v5555_v41  ;;  %v5582_v41 = vld [vmem:[%s7406_s11 + $0x8] sm:$0xff]  }
 0x36f   :  { %3460 = vmatprep.subr.bf16.mxu0 %v5560_v42  ;;  %v5583_v42 = vld [vmem:[%s7406_s11 + $0x10] sm:$0xff]  }
 0x372   :  { %3461 = vmatpush1.bf16.msra.mxu0 %v5558_v44  ;;  %v5585_v44 = vld [vmem:[%s7406_s11 + $0x20] sm:$0xff]  }
 0x375   :  { %3463 = vmatmul.mubr.bf16.vlgmr.msra.gmra.mrb[8].mxu0 %v2991_v46  ;;  %v4697_v46 = vld [vmem:[%s7407_s10] ss:$0 sm:$0xff] }
 0x448   :  { %v3464_v1 = vpop.f32.mrb[8].mxu0 }
 0x449   :  { %v4840_v2 = vadd.f32 %v3464_v1, %v3062_v63  ;;  %v3466_v3 = vpop.f32.mrb[9].mxu0  ;;  %v5598_v63 = vld [vmem:[%s7408_s13 + $0x34] ss:$8 sps:$4 sm:$0xff]   ;;  %v5601_v1 = vld [vmem:[%s7408_s13 + $0x44] ss:$8 sps:$4 sm:$0xff]  }
 0x44a   :  { %v4841_v5 = vadd.f32 %v3466_v3, %v3066_v0  ;;  %v3468_v6 = vpop.f32.mrb[10].mxu0  ;;  %v5596_v0 = vld [vmem:[%s7408_s13 + $0x30] ss:$8 sps:$4 sm:$0xff]   ;;  %v5604_v3 = vld [vmem:[%s7408_s13 + $0x54] ss:$8 sps:$4 sm:$0xff]  }
 0x44b   :  { %v4677_v7 = vmul.f32 -1.442695, %v4840_v2  ;;  %v3469_v8 = vpop.f32.mrb[11].mxu0  ;;  %v5607_v6 = vld [vmem:[%s7408_s13 + $0x64] ss:$8 sps:$4 sm:$0xff]  }
 0x44c   :  { %v4678_v9 = vmul.f32 -1.442695, %v4841_v5  ;;  %v5610_v8 = vld [vmem:[%s7408_s13 + $0x74] ss:$8 sps:$4 sm:$0xff]  }
 0x44d   :  { %5659 = vpow2.f32 %v4677_v7  ;;  %v5605_v7 = vld [vmem:[%s7408_s13 + $0x60] ss:$8 sps:$4 sm:$0xff]  }
 0x44e   :  { %5661 = vpow2.f32 %v4678_v9  ;;  %v5608_v9 = vld [vmem:[%s7408_s13 + $0x70] ss:$8 sps:$4 sm:$0xff]  }
 0x457   :  { %v5660_v10 = vpop.eup %5659 }
 0x458   :  { %v5662_v12 = vpop.eup %5661  ;;  %v3477_v14 = vadd.f32 1.0, %v5660_v10  ;;  %v5689_v10 = vmov 0  }
 0x459   :  { %v3478_v11 = vadd.f32 1.0, %v5662_v12  ;;  %v4704_v12 = vld [vmem:[%s7409_s12] ss:$0 sm:$0xff] }
 0x45a   :  { %5663 = vrcp.f32 %v3477_v14 }
 0x45b   :  { %5665 = vrcp.f32 %v3478_v11 }
 0x464   :  { %v5664_v15 = vpop.eup %5663 }
 0x465   :  { %v5666_v17 = vpop.eup %5665  ;;  %v3483_v20 = vmul.f32 %v5664_v15, %v4840_v2  ;;  %v5599_v2 = vld [vmem:[%s7408_s13 + $0x40] ss:$8 sps:$4 sm:$0xff]  }
 0x466   :  { %v3484_v21 = vmul.f32 %v5666_v17, %v4841_v5  ;;  %v5602_v5 = vld [vmem:[%s7408_s13 + $0x50] ss:$8 sps:$4 sm:$0xff]  }
 0x467   :  { %v3485_v23 = vpack.c.bf16 %v3483_v20, %v3483_v20 }
 0x468   :  { %v3486_v22 = vpack.c.bf16 %v3484_v21, %v3484_v21 }
 0x46a   :  { %3654 = vmatprep.mubr.bf16.mxu1 %v3486_v22 }
 0x46b   :  { %3655 = vmatmul.mubr.bf16.vlgmr.msra.gmra.mrb[8].mxu1 %v3485_v23 }
 0x46c   :  { %4805 = vmatpush3.bf16.msra.mxu1 %v5577_v24  ;;  %4812 = vmatprep.mubr.msk.bf16.mxu1 %vm5688_vm0, %v5687_v16 }
 0x46d   :  { %4806 = vmatprep.subr.bf16.mxu1 %v5687_v16 }
 0x470   :  { %4807 = vmatpush3.bf16.msra.mxu1 %v5578_v4 }
 0x471   :  { %4808 = vmatprep.subr.bf16.mxu1 %v5687_v16 }
 0x474   :  { %4809 = vmatpush3.bf16.msra.mxu1 %v5579_v25  ;;  %v5611_v25 = vld [vmem:[%s7410_s15 + $0x40] sm:$0xff]  }
 0x475   :  { %4810 = vmatprep.subr.bf16.mxu1 %v5687_v16 }
 0x478   :  { %4811 = vmatpush3.bf16.msra.mxu1 %v5580_v26  ;;  %v5612_v26 = vld [vmem:[%s7410_s15] sm:$0xff]  }
 0x479   :  { %4816 = vmatprep.subr.bf16.mxu1 %v5687_v16 }
 0x53e   :  { %v4764_v27 = vpop.f32.mrb[8].mxu1 }
 0x53f   :  { %v4765_v29 = vpop.f32.mrb[9].mxu1 }
 0x540   :  { %v4766_v30 = vadd.f32 %v4765_v29, %v4764_v27  ;;  %v4767_v31 = vpop.f32.mrb[10].mxu1  ;;  %v5613_v27 = vld [vmem:[%s7410_s15 + $0x48] sm:$0xff]   ;;  %v5615_v29 = vld [vmem:[%s7410_s15 + $0x50] sm:$0xff]  }
 0x541   :  { %v4768_v32 = vpop.f32.mrb[11].mxu1  ;;  %v5617_v31 = vld [vmem:[%s7410_s15 + $0x58] sm:$0xff]  }
 0x542   :  { %v3657_v33 = vadd.f32 %v4766_v30, %v4679_v28  ;;  %v5614_v28 = vld [vmem:[%s7410_s15 + $0x8] sm:$0xff]   ;;  %v5616_v30 = vld [vmem:[%s7410_s15 + $0x10] sm:$0xff]   ;;  %v5618_v32 = vld [vmem:[%s7410_s15 + $0x18] sm:$0xff]  }
 0x544   :  { %v4696_v34 = vmul.f32 -1.442695, %v3657_v33 }
 0x546   :  { %5667 = vpow2.f32 %v4696_v34  ;;  %v5620_v34 = vld [vmem:[%s7410_s15 + $0x20] sm:$0xff]  }
 0x550   :  { %v5668_v35 = vpop.eup %5667 }
 0x551   :  { %v3665_v36 = vadd.f32 1.0, %v5668_v35  ;;  %v5621_v35 = vld [vmem:[%s7410_s15 + $0x68] sm:$0xff]  }
 0x553   :  { %5669 = vrcp.f32 %v3665_v36  ;;  %v5622_v36 = vld [vmem:[%s7410_s15 + $0x28] sm:$0xff]  }
 0x55d   :  { %v5670_v37 = vpop.eup %5669 }
 0x55e   :  { %v3668_v38 = vmul.f32 %v5670_v37, %v3657_v33  ;;  %v5619_v33 = vld [vmem:[%s7410_s15 + $0x60] sm:$0xff]   ;;  %v5623_v37 = vld [vmem:[%s7410_s15 + $0x70] sm:$0xff]  }
 0x560   :  { %v3669_v39 = vpack.c.bf16 %v3668_v38, %v3668_v38  ;;  %v5624_v38 = vld [vmem:[%s7410_s15 + $0x30] sm:$0xff]  }
 0x562   :  { %4813 = vmatmul.mubr.msk.bf16.vlgmr.msra.gmra.mrb[12].mxu1 %vm3709_vm1, %v3669_v39  ;;  %v5625_v39 = vld [vmem:[%s7410_s15 + $0x78] sm:$0xff]  }
 0x563   :  { %4828 = vmatprep.mubr.msk.bf16.mxu1 %vm5688_vm0, %v5687_v16  ;;  %4817 = vmatpush3.bf16.msra.mxu1 %v5581_v40  ;;  %v5626_v40 = vld [vmem:[%s7410_s15 + $0x38] sm:$0xff]  }
 0x564   :  { %4818 = vmatprep.subr.bf16.mxu1 %v5687_v16 }
 0x567   :  { %4819 = vmatpush3.bf16.msra.mxu1 %v5582_v41  ;;  %v3884_v41 = vld [vmem:[%s7411_s14] sm:$0x3] }
 0x568   :  { %4820 = vmatprep.subr.bf16.mxu1 %v5687_v16 }
 0x56b   :  { %4821 = vmatpush3.bf16.msra.mxu1 %v5583_v42  ;;  %v3889_v42 = vrot.slane %v3884_v41, %v6784_v13 }
 0x56c   :  { %4822 = vmatprep.subr.bf16.mxu1 %v5687_v16 }
 0x56f   :  { %4823 = vmatpush3.bf16.msra.mxu1 %v5584_v43  ;;  %v3893_v43 = vrot.slane %v3884_v41, %v6787_v18 }
 0x570   :  { %4824 = vmatprep.subr.bf16.mxu1 %v5687_v16 }
 0x573   :  { %4825 = vmatpush3.bf16.msra.mxu1 %v5585_v44 }
 0x574   :  { %4826 = vmatprep.subr.bf16.mxu1 %v5687_v16 }
 0x577   :  { %4827 = vmatpush3.bf16.msra.mxu1 %v5586_v45 }
 0x578   :  { %3976 = vmatprep.subr.bf16.mxu1 %v5589_v57 }
 0x635   :  { %v3747_v47 = vpop.f32.mrb[12].mxu1 }
 0x636   :  { %v3748_v48 = vadd.f32 %v4697_v46, %v3747_v47  ;;  %v4814_v49 = vpop.f32.mrb[13].mxu1 }
 0x637   :  { %v3750_v50 = vpop.f32.mrb[14].mxu1 }
 0x638   :  { %v4703_v51 = vmul.f32 -1.442695, %v3748_v48  ;;  %v4815_v52 = vpop.f32.mrb[15].mxu1 }
 0x63a   :  { %5671 = vpow2.f32 %v4703_v51 }
 0x644   :  { %v5672_v53 = vpop.eup %5671 }
 0x645   :  { %v3756_v54 = vadd.f32 1.0, %v5672_v53 }
 0x647   :  { %5673 = vrcp.f32 %v3756_v54 }
 0x651   :  { %v5674_v55 = vpop.eup %5673 }
 0x652   :  { %v3759_v56 = vmul.f32 %v5674_v55, %v3748_v48 }
 0x654   :  { %v3760_v19 = vpack.c.bf16 %v3759_v56, %v3759_v56 }
 0x656   :  { %4829 = vmatmul.mubr.msk.bf16.vlgmr.msra.gmra.mrb[16].mxu1 %vm3816_vm2, %v3760_v19 }
 0x657   :  { %3977 = vmatpush1.bf16.msra.mxu1 %v5587_v58  ;;  %4008 = vmatprep.mubr.bf16.mxu1 %v5689_v10 }
 0x658   :  { %3978 = vmatprep.subr.bf16.mxu1 %v5592_v59 }
 0x65b   :  { %3979 = vmatpush1.bf16.msra.mxu1 %v5590_v60  ;;  %v4731_v60 = vld [vmem:[%s7412_s16] ss:$0 sm:$0xff] }
 0x65c   :  { %3980 = vmatprep.subr.bf16.mxu1 %v5595_v61 }
 0x65f   :  { %3981 = vmatpush1.bf16.msra.mxu1 %v5593_v62 }
 0x660   :  { %3982 = vmatprep.subr.bf16.mxu1 %v5598_v63 }
 0x663   :  { %3983 = vmatpush1.bf16.msra.mxu1 %v5596_v0 }
 0x664   :  { %3984 = vmatprep.subr.bf16.mxu1 %v5601_v1 }
 0x667   :  { %3985 = vmatpush1.bf16.msra.mxu1 %v5599_v2 }
 0x668   :  { %3986 = vmatprep.subr.bf16.mxu1 %v5604_v3 }
 0x66b   :  { %3987 = vmatpush1.bf16.msra.mxu1 %v5602_v5 }
 0x66c   :  { %3988 = vmatprep.subr.bf16.mxu1 %v5607_v6 }
 0x66f   :  { %3989 = vmatpush1.bf16.msra.mxu1 %v5605_v7 }
 0x670   :  { %3990 = vmatprep.subr.bf16.mxu1 %v5610_v8 }
 0x673   :  { %3991 = vmatpush1.bf16.msra.mxu1 %v5608_v9 }
 0x674   :  { %4782 = vmatprep.subr.bf16.mxu1 %v5611_v25 }
 0x729   :  { %v3854_v14 = vpop.f32.mrb[16].mxu1 }
 0x72a   :  { %v3855_v11 = vadd.f32 %v4704_v12, %v3854_v14  ;;  %v4830_v15 = vpop.f32.mrb[17].mxu1 }
 0x72b   :  { %v3857_v17 = vpop.f32.mrb[18].mxu1 }
 0x72c   :  { %v4712_v20 = vmul.f32 -1.442695, %v3855_v11  ;;  %v4831_v21 = vpop.f32.mrb[19].mxu1 }
 0x72e   :  { %5675 = vpow2.f32 %v4712_v20 }
 0x738   :  { %v5676_v22 = vpop.eup %5675 }
 0x739   :  { %v3863_v23 = vadd.f32 1.0, %v5676_v22 }
 0x73b   :  { %5677 = vrcp.f32 %v3863_v23 }
 0x745   :  { %v5678_v24 = vpop.eup %5677 }
 0x746   :  { %v3866_v16 = vmul.f32 %v5678_v24, %v3855_v11 }
 0x748   :  { %v3867_v4 = vpack.c.bf16 %v3866_v16, %v3866_v16 }
 0x74a   :  { %4009 = vmatmul.mubr.bf16.vlgmr.msra.gmra.mrb[20].mxu1 %v3867_v4 }
 0x74b   :  { %4783 = vmatpush3.bf16.msra.mxu1 %v5612_v26 }
 0x74c   :  { %4784 = vmatprep.subr.bf16.mxu1 %v5613_v27 }
 0x74f   :  { %4785 = vmatpush3.bf16.msra.mxu1 %v5614_v28 }
 0x750   :  { %4786 = vmatprep.subr.bf16.mxu1 %v5615_v29 }
 0x753   :  { %4787 = vmatpush3.bf16.msra.mxu1 %v5616_v30 }
 0x754   :  { %4788 = vmatprep.subr.bf16.mxu1 %v5617_v31 }
 0x757   :  { %4789 = vmatpush3.bf16.msra.mxu1 %v5618_v32 }
 0x758   :  { %4790 = vmatprep.subr.bf16.mxu1 %v5619_v33 }
 0x75b   :  { %4791 = vmatpush3.bf16.msra.mxu1 %v5620_v34 }
 0x75c   :  { %4792 = vmatprep.subr.bf16.mxu1 %v5621_v35 }
 0x75f   :  { %4793 = vmatpush3.bf16.msra.mxu1 %v5622_v36 }
 0x760   :  { %4794 = vmatprep.subr.bf16.mxu1 %v5623_v37 }
 0x763   :  { %4795 = vmatpush3.bf16.msra.mxu1 %v5624_v38 }
 0x764   :  { %4796 = vmatprep.subr.bf16.mxu1 %v5625_v39 }
 0x767   :  { %4797 = vmatpush3.bf16.msra.mxu1 %v5626_v40 }
 0x81d   :  { %v4010_v44 = vpop.f32.mrb[20].mxu1 }
 0x81e   :  { %v4011_v45 = vadd.f32 %v4010_v44, %v3889_v42  ;;  %v4012_v46 = vpop.f32.mrb[21].mxu1 }
 0x81f   :  { %v4013_v47 = vadd.f32 %v4012_v46, %v3893_v43  ;;  %v4014_v48 = vpop.f32.mrb[22].mxu1 }
 0x820   :  { %v4729_v49 = vmul.f32 -1.442695, %v4011_v45  ;;  %v4015_v50 = vpop.f32.mrb[23].mxu1 }
 0x821   :  { %v4730_v51 = vmul.f32 -1.442695, %v4013_v47 }
 0x822   :  { %5679 = vpow2.f32 %v4729_v49 }
 0x823   :  { %5681 = vpow2.f32 %v4730_v51 }
 0x82c   :  { %v5680_v52 = vpop.eup %5679 }
 0x82d   :  { %v5682_v53 = vpop.eup %5681  ;;  %v4023_v54 = vadd.f32 1.0, %v5680_v52 }
 0x82e   :  { %v4024_v55 = vadd.f32 1.0, %v5682_v53 }
 0x82f   :  { %5683 = vrcp.f32 %v4023_v54 }
 0x830   :  { %5685 = vrcp.f32 %v4024_v55 }
 0x839   :  { %v5684_v56 = vpop.eup %5683 }
 0x83a   :  { %v5686_v13 = vpop.eup %5685  ;;  %v4029_v19 = vmul.f32 %v5684_v56, %v4011_v45 }
 0x83b   :  { %v4030_v18 = vmul.f32 %v5686_v13, %v4013_v47 }
 0x83c   :  { %v4031_v58 = vpack.c.bf16 %v4029_v19, %v4029_v19 }
 0x83d   :  { %v4032_v57 = vpack.c.bf16 %v4030_v18, %v4030_v18 }
 0x83f   :  { %4200 = vmatprep.mubr.bf16.mxu1 %v4032_v57 }
 0x840   :  { %4201 = vmatmul.mubr.bf16.vlgmr.msra.gmra.mrb[24].mxu1 %v4031_v58 }
 0x913   :  { %v4798_v59 = vpop.f32.mrb[24].mxu1 }
 0x914   :  { %v4799_v61 = vpop.f32.mrb[25].mxu1 }
 0x915   :  { %v4800_v62 = vadd.f32 %v4799_v61, %v4798_v59  ;;  %v4801_v63 = vpop.f32.mrb[26].mxu1 }
 0x916   :  { %v4802_v0 = vpop.f32.mrb[27].mxu1 }
 0x917   :  { %v4203_v1 = vadd.f32 %v4800_v62, %v4731_v60 }
 0x919   :  { %4208 = vst [vmem:[%s7413_s17] sm:$0xff] %v4203_v1 }

</bundles_post_ra>
